<compile_context>
chip_gen: v7x
topology: tpu7x:2x2x1
jax: 0.10.0
libtpu: 0.0.40
codegen_flags: <defaults>
</compile_context>

<pallas_src>
import jax
import jax.numpy as jnp
from jax import lax
from jax.experimental import pallas as pl
from jax.experimental.pallas import tpu as pltpu


# --------------------------------------------------------------------------------------
# Fused kernel: batched input projection + LSTM recurrence + policy/value heads
# --------------------------------------------------------------------------------------
def fused_lstm_ppo_kernel(x_ref, wfx_ref, bfx_ref, whh_ref, h0_ref, c0_ref,
                          w1_ref, b1_ref, w2_ref, b2_ref,
                          head_ref, hn_ref, cn_ref,
                          gates_scr, out_scr, h_scr, c_scr):
    ci = pl.program_id(0)
    n_chunks = pl.num_programs(0)

    B = h0_ref.shape[0]            # sublane-padded batch
    H = h0_ref.shape[1]
    rows = x_ref.shape[0]          # TC * B rows in this time chunk
    TC = rows // B

    @pl.when(ci == 0)
    def _init():
        h_scr[...] = h0_ref[...]
        c_scr[...] = c0_ref[...]

    # (1) Fused encoder + input projection for the whole chunk: one bf16 MXU matmul (f32 acc).
    gates_scr[...] = (jnp.dot(x_ref[...], wfx_ref[...],
                              preferred_element_type=jnp.float32) + bfx_ref[...])

    # (2) Sequential recurrence: only h @ W_hh + gate nonlinearities per timestep.
    w_hh = whh_ref[...]                                      # bf16

    lane_aligned = (H % 128) == 0
    if not lane_aligned:
        # hoisted once per chunk (JAX does not CSE broadcast_in_dim inside the loop)
        lane = lax.broadcasted_iota(jnp.int32, (B, 4 * H), 1)
        g_mask = (lane >= 2 * H) & (lane < 3 * H)

    def step(t, carry):
        h, c = carry
        row = pl.multiple_of(t * B, B)
        gates = gates_scr[pl.ds(row, B), :] + jnp.dot(
            h.astype(jnp.bfloat16), w_hh,
            preferred_element_type=jnp.float32)               # (B, 4H) f32

        if lane_aligned:
            # lane-aligned slices: sigmoid on i/f/o, tanh only on g.
            i_g = jax.nn.sigmoid(gates[:, 0 * H:1 * H])
            f_g = jax.nn.sigmoid(gates[:, 1 * H:2 * H])
            g_g = jnp.tanh(gates[:, 2 * H:3 * H])
            o_g = jax.nn.sigmoid(gates[:, 3 * H:4 * H])
        else:
            # sub-128 H: full-vreg sigmoid/tanh + lane-mask blend (PyTorch gate order i,f,g,o).
            sig_all = jax.nn.sigmoid(gates)
            tan_all = jnp.tanh(gates)
            acts = jnp.where(g_mask, tan_all, sig_all)
            i_g = acts[:, 0 * H:1 * H]
            f_g = acts[:, 1 * H:2 * H]
            g_g = acts[:, 2 * H:3 * H]
            o_g = acts[:, 3 * H:4 * H]

        c_new = f_g * c + i_g * g_g
        h_new = o_g * jnp.tanh(c_new)
        out_scr[pl.ds(row, B), :] = h_new
        return h_new, c_new

    unroll = TC if TC <= 8 else max(d for d in (8, 4, 2, 1) if TC % d == 0)
    h_fin, c_fin = lax.fori_loop(0, TC, step, (h_scr[...], c_scr[...]), unroll=unroll)
    h_scr[...] = h_fin
    c_scr[...] = c_fin

    # (3) Fused policy/value heads on the in-VMEM chunk of LSTM outputs (bf16 MXU, f32 acc).
    #     layer 1: concatenated [W_pol1 | W_val1]; layer 2: block-diag, zero-padded to a
    #     lane-dense 128-wide output slab.
    # TODO(synk): at large TC, shift the head compute one chunk back so it hides behind the
    # next chunk's latency-bound recurrence.
    z = jnp.tanh(out_scr[...]).astype(jnp.bfloat16)                            # (rows, H)
    h1 = jnp.tanh(jnp.dot(z, w1_ref[...],
                          preferred_element_type=jnp.float32) + b1_ref[...])   # (rows, 2H)
    head_ref[...] = (jnp.dot(h1.astype(jnp.bfloat16), w2_ref[...],
                             preferred_element_type=jnp.float32)
                     + b2_ref[...]).astype(head_ref.dtype)                     # (rows, 128)

    # (4) Final hidden/cell state: write only on the last chunk.
    @pl.when(ci == n_chunks - 1)
    def _fin():
        hn_ref[...] = h_fin.astype(hn_ref.dtype)
        cn_ref[...] = c_fin.astype(cn_ref.dtype)


# --------------------------------------------------------------------------------------
# Chip-aware VMEM budgets and time-chunk sizing
# --------------------------------------------------------------------------------------
def _vmem_budget():
    kind = jax.devices()[0].device_kind.lower()
    if "v7" in kind:
        return 16 << 20, 40 << 20        # v7x: only 64 MiB VMEM per TC — keep headroom
    if any(v in kind for v in ("v4", "v5", "v6")):
        return 32 << 20, 96 << 20        # 128 MiB physical VMEM
    return 6 << 20, 16 << 20             # conservative fallback


def _pick_time_chunk(T, Bp, S, H, head_out, budget_bytes):
    # bytes resident per timestep of a chunk: bf16 x (double-buffered), f32 gates scratch,
    # f32 LSTM-out scratch, f32 head output (double-buffered).
    per_t = Bp * (2 * 2 * S + 4 * 4 * H + 4 * H + 2 * 4 * head_out)
    cap = max(1, budget_bytes // max(per_t, 1))
    valid = [tc for tc in range(1, T + 1)
             if T % tc == 0 and (tc == T or (tc * Bp) % 16 == 0)]   # bf16 sublane tiling
    fitting = [tc for tc in valid if tc <= cap]
    return max(fitting) if fitting else min(valid)


# --------------------------------------------------------------------------------------
# Wrapper
# --------------------------------------------------------------------------------------
@jax.jit
def lstm_ppo_forward(state, hidden_state, candidate_state, params):
    """
    state:           (B, T, S)  float32
    hidden_state:    (1, B, H)  float32   (PyTorch LSTM h0 layout)
    candidate_state: (1, B, H)  float32   (PyTorch LSTM c0 layout)
    returns: policy (B*T, A), value (B*T, 1), h (1, B, H), c (1, B, H)
    """
    B, T, S = state.shape
    H = hidden_state.shape[-1]
    A = params["w_pol2"].shape[1]
    f32, bf16 = jnp.float32, jnp.bfloat16

    Bp = ((B + 7) // 8) * 8                                  # sublane-pad the batch
    head_out = max(128, ((A + 1 + 127) // 128) * 128)        # lane-dense head width

    # ---- wrapper-side param prep (hoisted out of the recurrence) ----
    w_fx = (params["w_enc"] @ params["w_ih"]).astype(bf16)                     # (S, 4H)
    b_fx = (params["b_enc"] @ params["w_ih"]
            + params["b_ih"] + params["b_hh"]).reshape(1, 4 * H)               # (1, 4H)
    w_hh = params["w_hh"].astype(bf16)                                         # (H, 4H)
    w1 = jnp.concatenate([params["w_pol1"], params["w_val1"]], axis=1).astype(bf16)
    b1 = jnp.concatenate([params["b_pol1"], params["b_val1"]]).reshape(1, 2 * H)
    w2 = (jnp.zeros((2 * H, head_out), f32)
          .at[:H, :A].set(params["w_pol2"])
          .at[H:, A:A + 1].set(params["w_val2"])).astype(bf16)                 # (2H, 128)
    b2 = (jnp.zeros((1, head_out), f32)
          .at[0, :A].set(params["b_pol2"])
          .at[0, A:A + 1].set(params["b_val2"]))                               # (1, 128)

    # time-major, batch sublane-padded inputs: kernel row index = t*Bp + b
    x_tm = jnp.transpose(state, (1, 0, 2))                                     # (T, B, S)
    h0 = hidden_state[0]
    c0 = candidate_state[0]
    if Bp != B:
        x_tm = jnp.pad(x_tm, ((0, 0), (0, Bp - B), (0, 0)))
        h0 = jnp.pad(h0, ((0, Bp - B), (0, 0)))
        c0 = jnp.pad(c0, ((0, Bp - B), (0, 0)))
    x_tm = x_tm.reshape(T * Bp, S).astype(bf16)

    budget, vmem_limit = _vmem_budget()
    TC = _pick_time_chunk(T, Bp, S, H, head_out, budget)
    n_chunks = T // TC
    rows = TC * Bp
    const = lambda i: (0, 0)

    # TODO(synk): on v7x, shard the (independent) batch across the 2 TensorCores with a
    # leading "parallel" grid axis once Bp/2 is a sublane multiple; single-core here.
    head_tm, h_n, c_n = pl.pallas_call(
        fused_lstm_ppo_kernel,
        out_shape=(
            jax.ShapeDtypeStruct((T * Bp, head_out), f32),
            jax.ShapeDtypeStruct((Bp, H), f32),
            jax.ShapeDtypeStruct((Bp, H), f32),
        ),
        grid_spec=pltpu.PrefetchScalarGridSpec(
            num_scalar_prefetch=0,
            grid=(n_chunks,),
            in_specs=[
                pl.BlockSpec((rows, S), lambda i: (i, 0)),      # x (time-chunked, bf16)
                pl.BlockSpec((S, 4 * H), const),                # fused W_enc @ W_ih (bf16)
                pl.BlockSpec((1, 4 * H), const),                # fused bias (f32)
                pl.BlockSpec((H, 4 * H), const),                # W_hh (bf16)
                pl.BlockSpec((Bp, H), const),                   # h0
                pl.BlockSpec((Bp, H), const),                   # c0
                pl.BlockSpec((H, 2 * H), const),                # [W_pol1 | W_val1] (bf16)
                pl.BlockSpec((1, 2 * H), const),                # [b_pol1 | b_val1]
                pl.BlockSpec((2 * H, head_out), const),         # block-diag layer-2 W (bf16)
                pl.BlockSpec((1, head_out), const),             # layer-2 bias
            ],
            out_specs=[
                pl.BlockSpec((rows, head_out), lambda i: (i, 0)),  # lane-dense head slab
                pl.BlockSpec((Bp, H), const),                      # h_n
                pl.BlockSpec((Bp, H), const),                      # c_n
            ],
            scratch_shapes=[
                pltpu.VMEM((rows, 4 * H), f32),                 # chunk input-proj gates
                pltpu.VMEM((rows, H), f32),                     # chunk LSTM outputs
                pltpu.VMEM((Bp, H), f32),                       # h carry
                pltpu.VMEM((Bp, H), f32),                       # c carry
            ],
        ),
        compiler_params=pltpu.CompilerParams(
            dimension_semantics=("arbitrary",),                 # recurrent axis
            vmem_limit_bytes=vmem_limit),
    )(x_tm, w_fx, b_fx, w_hh, h0, c0, w1, b1, w2, b2)

    # tiny head slab: time-major (t*Bp+b) -> PyTorch batch_first (b*T+t); strip batch
    # padding and the zero-padded lanes.
    head_bt = jnp.transpose(head_tm.reshape(T, Bp, head_out), (1, 0, 2))[:B]
    head_bt = head_bt.reshape(B * T, head_out)
    policy = head_bt[:, :A]
    value = head_bt[:, A:A + 1]
    return policy, value, h_n[:B][None], c_n[:B][None]


# --------------------------------------------------------------------------------------
# Deterministic parameter init (mirrors the module's shapes)
# --------------------------------------------------------------------------------------
def _orthogonal(key, shape, gain):
    n, m = shape
    a = jax.random.normal(key, (max(n, m), min(n, m)), dtype=jnp.float32)
    q, r = jnp.linalg.qr(a)
    q = q * jnp.sign(jnp.diag(r))
    q = q[:max(n, m), :min(n, m)]
    if n < m:
        q = q.T
    return (gain * q).astype(jnp.float32)


def init_params(key, state_size, embed_size, hidden_size, action_size):
    ks = jax.random.split(key, 10)
    H = hidden_size
    u = 1.0 / jnp.sqrt(jnp.float32(H))
    return {
        # encoder Linear(state_size -> embed), stored as (in, out)
        "w_enc": _orthogonal(ks[0], (state_size, embed_size), gain=jnp.sqrt(2.0)),
        "b_enc": jnp.zeros((embed_size,), jnp.float32),
        # LSTM weights, stored transposed: (input, 4H) / (H, 4H), gate order i,f,g,o
        "w_ih": jax.random.uniform(ks[1], (embed_size, 4 * H), jnp.float32, -u, u),
        "w_hh": jax.random.uniform(ks[2], (H, 4 * H), jnp.float32, -u, u),
        "b_ih": jax.random.uniform(ks[3], (4 * H,), jnp.float32, -u, u),
        "b_hh": jax.random.uniform(ks[4], (4 * H,), jnp.float32, -u, u),
        # policy head
        "w_pol1": _orthogonal(ks[5], (H, H), gain=jnp.sqrt(2.0)),
        "b_pol1": jnp.zeros((H,), jnp.float32),
        "w_pol2": _orthogonal(ks[6], (H, action_size), gain=0.01),
        "b_pol2": jnp.zeros((action_size,), jnp.float32),
        # value head
        "w_val1": _orthogonal(ks[7], (H, H), gain=jnp.sqrt(2.0)),
        "b_val1": jnp.zeros((H,), jnp.float32),
        "w_val2": _orthogonal(ks[8], (H, 1), gain=1.0),
        "b_val2": jnp.zeros((1,), jnp.float32),
    }


# --------------------------------------------------------------------------------------
# Pure-JAX reference (original, unfused f32 math) for the correctness check
# --------------------------------------------------------------------------------------
def reference_forward(state, h0, c0, params):
    B, T, S = state.shape
    H = h0.shape[-1]
    e = state @ params["w_enc"] + params["b_enc"]            # (B, T, E)
    bg = params["b_ih"] + params["b_hh"]

    def step(carry, x_t):
        h, c = carry
        gates = x_t @ params["w_ih"] + h @ params["w_hh"] + bg
        i = jax.nn.sigmoid(gates[:, 0 * H:1 * H])
        f = jax.nn.sigmoid(gates[:, 1 * H:2 * H])
        g = jnp.tanh(gates[:, 2 * H:3 * H])
        o = jax.nn.sigmoid(gates[:, 3 * H:4 * H])
        c_new = f * c + i * g
        h_new = o * jnp.tanh(c_new)
        return (h_new, c_new), h_new

    (h_n, c_n), outs = lax.scan(step, (h0[0], c0[0]), jnp.transpose(e, (1, 0, 2)))
    out = jnp.transpose(outs, (1, 0, 2)).reshape(B * T, H)
    z = jnp.tanh(out)
    pol = jnp.tanh(z @ params["w_pol1"] + params["b_pol1"]) @ params["w_pol2"] + params["b_pol2"]
    val = jnp.tanh(z @ params["w_val1"] + params["b_val1"]) @ params["w_val2"] + params["b_val2"]
    return pol, val, h_n[None], c_n[None]


if __name__ == "__main__":
    B, T = 2, 8
    STATE_SIZE, EMBED, HIDDEN, ACTIONS = 16, 32, 32, 4

    key = jax.random.PRNGKey(0)
    k_state, k_h, k_c, k_params = jax.random.split(key, 4)

    state = jax.random.normal(k_state, (B, T, STATE_SIZE), jnp.float32)
    hidden_state = jax.random.normal(k_h, (1, B, HIDDEN), jnp.float32)
    candidate_state = jax.random.normal(k_c, (1, B, HIDDEN), jnp.float32)
    params = init_params(k_params, STATE_SIZE, EMBED, HIDDEN, ACTIONS)

    policy, value, h_n, c_n = lstm_ppo_forward(state, hidden_state, candidate_state, params)
    jax.block_until_ready((policy, value, h_n, c_n))

    # sanity-check against pure-JAX (f32, unfused) reference; bf16 matmul-operand tolerance
    p_ref, v_ref, h_ref, c_ref = reference_forward(state, hidden_state, candidate_state, params)
    assert policy.shape == (B * T, ACTIONS) and value.shape == (B * T, 1)
    assert h_n.shape == (1, B, HIDDEN) and c_n.shape == (1, B, HIDDEN)
    tol = dict(atol=5e-2, rtol=5e-2)
    assert jnp.allclose(policy, p_ref, **tol)
    assert jnp.allclose(value, v_ref, **tol)
    assert jnp.allclose(h_n, h_ref, **tol)
    assert jnp.allclose(c_n, c_ref, **tol)

    print("KERNEL_OK")
</pallas_src>

<mosaic_0001>
module attributes {stable_mosaic.version = 11 : i64} {
  func.func @fused_lstm_ppo_kernel(%arg0: i32, %arg1: memref<64x16xbf16, #tpu.memory_space<vmem>>, %arg2: memref<16x128xbf16, #tpu.memory_space<vmem>>, %arg3: memref<1x128xf32, #tpu.memory_space<vmem>>, %arg4: memref<32x128xbf16, #tpu.memory_space<vmem>>, %arg5: memref<8x32xf32, #tpu.memory_space<vmem>>, %arg6: memref<8x32xf32, #tpu.memory_space<vmem>>, %arg7: memref<32x64xbf16, #tpu.memory_space<vmem>>, %arg8: memref<1x64xf32, #tpu.memory_space<vmem>>, %arg9: memref<64x128xbf16, #tpu.memory_space<vmem>>, %arg10: memref<1x128xf32, #tpu.memory_space<vmem>>, %arg11: memref<64x128xf32, #tpu.memory_space<vmem>>, %arg12: memref<8x32xf32, #tpu.memory_space<vmem>>, %arg13: memref<8x32xf32, #tpu.memory_space<vmem>>, %arg14: memref<64x128xf32, #tpu.memory_space<vmem>>, %arg15: memref<64x32xf32, #tpu.memory_space<vmem>>, %arg16: memref<8x32xf32, #tpu.memory_space<vmem>>, %arg17: memref<8x32xf32, #tpu.memory_space<vmem>>) attributes {dimension_semantics = [#tpu.dimension_semantics<arbitrary>], iteration_bounds = array<i64: 1>, scalar_prefetch = 0 : i64, scratch_operands = 4 : i64, tpu.core_type = #tpu.core_type<tc>, window_params = [{transform_indices = @transform_0, window_bounds = array<i64: 64, 16>}, {pipeline_mode = #tpu.pipeline_mode<synchronous>, transform_indices = @transform_1, window_bounds = array<i64: 16, 128>}, {pipeline_mode = #tpu.pipeline_mode<synchronous>, transform_indices = @transform_2, window_bounds = array<i64: 1, 128>}, {pipeline_mode = #tpu.pipeline_mode<synchronous>, transform_indices = @transform_3, window_bounds = array<i64: 32, 128>}, {pipeline_mode = #tpu.pipeline_mode<synchronous>, transform_indices = @transform_4, window_bounds = array<i64: 8, 32>}, {pipeline_mode = #tpu.pipeline_mode<synchronous>, transform_indices = @transform_5, window_bounds = array<i64: 8, 32>}, {pipeline_mode = #tpu.pipeline_mode<synchronous>, transform_indices = @transform_6, window_bounds = array<i64: 32, 64>}, {pipeline_mode = #tpu.pipeline_mode<synchronous>, transform_indices = @transform_7, window_bounds = array<i64: 1, 64>}, {pipeline_mode = #tpu.pipeline_mode<synchronous>, transform_indices = @transform_8, window_bounds = array<i64: 64, 128>}, {pipeline_mode = #tpu.pipeline_mode<synchronous>, transform_indices = @transform_9, window_bounds = array<i64: 1, 128>}, {transform_indices = @transform_10, window_bounds = array<i64: 64, 128>}, {pipeline_mode = #tpu.pipeline_mode<synchronous>, transform_indices = @transform_11, window_bounds = array<i64: 8, 32>}, {pipeline_mode = #tpu.pipeline_mode<synchronous>, transform_indices = @transform_12, window_bounds = array<i64: 8, 32>}]} {
    %c0_i32 = arith.constant 0 : i32
    %0 = arith.cmpi eq, %arg0, %c0_i32 : i32
    %1 = arith.extui %0 : i1 to i32
    %c0_i32_0 = arith.constant 0 : i32
    %2 = arith.cmpi ne, %1, %c0_i32_0 : i32
    scf.if %2 {
      %c0_75 = arith.constant 0 : index
      %c0_76 = arith.constant 0 : index
      %240 = vector.load %arg5[%c0_75, %c0_76] : memref<8x32xf32, #tpu.memory_space<vmem>>, vector<8x32xf32>
      %c0_77 = arith.constant 0 : index
      %c0_78 = arith.constant 0 : index
      %241 = vector.load %arg16[%c0_77, %c0_78] : memref<8x32xf32, #tpu.memory_space<vmem>>, vector<8x32xf32>
      tpu.vector_store %arg16[%c0_77, %c0_78], %240 {strides = array<i32>} : memref<8x32xf32, #tpu.memory_space<vmem>>, vector<8x32xf32>,
      %c0_79 = arith.constant 0 : index
      %c0_80 = arith.constant 0 : index
      %242 = vector.load %arg6[%c0_79, %c0_80] : memref<8x32xf32, #tpu.memory_space<vmem>>, vector<8x32xf32>
      %c0_81 = arith.constant 0 : index
      %c0_82 = arith.constant 0 : index
      %243 = vector.load %arg17[%c0_81, %c0_82] : memref<8x32xf32, #tpu.memory_space<vmem>>, vector<8x32xf32>
      tpu.vector_store %arg17[%c0_81, %c0_82], %242 {strides = array<i32>} : memref<8x32xf32, #tpu.memory_space<vmem>>, vector<8x32xf32>,
    } else {
    }
    %c0 = arith.constant 0 : index
    %c0_1 = arith.constant 0 : index
    %3 = vector.load %arg1[%c0, %c0_1] : memref<64x16xbf16, #tpu.memory_space<vmem>>, vector<64x16xbf16>
    %c0_2 = arith.constant 0 : index
    %c0_3 = arith.constant 0 : index
    %4 = vector.load %arg2[%c0_2, %c0_3] : memref<16x128xbf16, #tpu.memory_space<vmem>>, vector<16x128xbf16>
    %cst = arith.constant dense<0.000000e+00> : vector<64x128xf32>
    %5 = tpu.matmul %3, %4, %cst {dimension_numbers = #tpu.dot_dimension_numbers<[1], [0], [0], [1], [0, 0, 1, 1], [], []>} : vector<64x16xbf16>, vector<16x128xbf16>, vector<64x128xf32> -> vector<64x128xf32>
    %c0_4 = arith.constant 0 : index
    %c0_5 = arith.constant 0 : index
    %6 = vector.load %arg3[%c0_4, %c0_5] : memref<1x128xf32, #tpu.memory_space<vmem>>, vector<1x128xf32>
    %7 = vector.broadcast %6 : vector<1x128xf32> to vector<64x128xf32>
    %8 = arith.addf %5, %7 : vector<64x128xf32>
    %c0_6 = arith.constant 0 : index
    %c0_7 = arith.constant 0 : index
    %9 = vector.load %arg14[%c0_6, %c0_7] : memref<64x128xf32, #tpu.memory_space<vmem>>, vector<64x128xf32>
    tpu.vector_store %arg14[%c0_6, %c0_7], %8 {strides = array<i32>} : memref<64x128xf32, #tpu.memory_space<vmem>>, vector<64x128xf32>,
    %c0_8 = arith.constant 0 : index
    %c0_9 = arith.constant 0 : index
    %10 = vector.load %arg4[%c0_8, %c0_9] : memref<32x128xbf16, #tpu.memory_space<vmem>>, vector<32x128xbf16>
    %11 = tpu.iota {dimensions = array<i32: 1>} : vector<8x128xi32>
    %c64_i32 = arith.constant 64 : i32
    %12 = vector.broadcast %c64_i32 : i32 to vector<8x128xi32>
    %13 = arith.cmpi sge, %11, %12 : vector<8x128xi32>
    %c96_i32 = arith.constant 96 : i32
    %14 = vector.broadcast %c96_i32 : i32 to vector<8x128xi32>
    %15 = arith.cmpi slt, %11, %14 : vector<8x128xi32>
    %16 = arith.andi %13, %15 : vector<8x128xi1>
    %c0_10 = arith.constant 0 : index
    %c0_11 = arith.constant 0 : index
    %17 = vector.load %arg16[%c0_10, %c0_11] : memref<8x32xf32, #tpu.memory_space<vmem>>, vector<8x32xf32>
    %c0_12 = arith.constant 0 : index
    %c0_13 = arith.constant 0 : index
    %18 = vector.load %arg17[%c0_12, %c0_13] : memref<8x32xf32, #tpu.memory_space<vmem>>, vector<8x32xf32>
    %c0_i32_14 = arith.constant 0 : i32
    %c8_i32 = arith.constant 8 : i32
    %19 = arith.muli %c0_i32_14, %c8_i32 : i32
    %20 = tpu.assume_multiple %19, 8 : i32
    %21 = arith.index_cast %20 : i32 to index
    %c0_15 = arith.constant 0 : index
    %22 = vector.load %arg14[%21, %c0_15] : memref<64x128xf32, #tpu.memory_space<vmem>>, vector<8x128xf32>
    %23 = arith.truncf %17 : vector<8x32xf32> to vector<8x32xbf16>
    %cst_16 = arith.constant dense<0.000000e+00> : vector<8x128xf32>
    %24 = tpu.matmul %23, %10, %cst_16 {dimension_numbers = #tpu.dot_dimension_numbers<[1], [0], [0], [1], [0, 0, 1, 1], [], []>} : vector<8x32xbf16>, vector<32x128xbf16>, vector<8x128xf32> -> vector<8x128xf32>
    %25 = arith.addf %22, %24 : vector<8x128xf32>
    %26 = arith.negf %25 : vector<8x128xf32>
    %27 = math.exp %26 : vector<8x128xf32>
    %cst_17 = arith.constant 1.000000e+00 : f32
    %28 = vector.broadcast %cst_17 : f32 to vector<8x128xf32>
    %29 = arith.addf %28, %27 : vector<8x128xf32>
    %30 = arith.divf %28, %29 : vector<8x128xf32>
    %31 = math.tanh %25 : vector<8x128xf32>
    %32 = arith.select %16, %31, %30 : vector<8x128xi1>, vector<8x128xf32>
    %33 = vector.extract_strided_slice %32 {offsets = [0, 0], sizes = [8, 32], strides = [1, 1]} : vector<8x128xf32> to vector<8x32xf32>
    %34 = vector.extract_strided_slice %32 {offsets = [0, 32], sizes = [8, 32], strides = [1, 1]} : vector<8x128xf32> to vector<8x32xf32>
    %35 = vector.extract_strided_slice %32 {offsets = [0, 64], sizes = [8, 32], strides = [1, 1]} : vector<8x128xf32> to vector<8x32xf32>
    %36 = vector.extract_strided_slice %32 {offsets = [0, 96], sizes = [8, 32], strides = [1, 1]} : vector<8x128xf32> to vector<8x32xf32>
    %37 = arith.mulf %34, %18 : vector<8x32xf32>
    %38 = arith.mulf %33, %35 : vector<8x32xf32>
    %39 = arith.addf %37, %38 : vector<8x32xf32>
    %40 = math.tanh %39 : vector<8x32xf32>
    %41 = arith.mulf %36, %40 : vector<8x32xf32>
    %42 = arith.index_cast %20 : i32 to index
    %c0_18 = arith.constant 0 : index
    %43 = vector.load %arg15[%42, %c0_18] : memref<64x32xf32, #tpu.memory_space<vmem>>, vector<8x32xf32>
    tpu.vector_store %arg15[%42, %c0_18], %41 {strides = array<i32>} : memref<64x32xf32, #tpu.memory_space<vmem>>, vector<8x32xf32>,
    %c1_i32 = arith.constant 1 : i32
    %c8_i32_19 = arith.constant 8 : i32
    %44 = arith.muli %c1_i32, %c8_i32_19 : i32
    %45 = tpu.assume_multiple %44, 8 : i32
    %46 = arith.index_cast %45 : i32 to index
    %c0_20 = arith.constant 0 : index
    %47 = vector.load %arg14[%46, %c0_20] : memref<64x128xf32, #tpu.memory_space<vmem>>, vector<8x128xf32>
    %48 = arith.truncf %41 : vector<8x32xf32> to vector<8x32xbf16>
    %cst_21 = arith.constant dense<0.000000e+00> : vector<8x128xf32>
    %49 = tpu.matmul %48, %10, %cst_21 {dimension_numbers = #tpu.dot_dimension_numbers<[1], [0], [0], [1], [0, 0, 1, 1], [], []>} : vector<8x32xbf16>, vector<32x128xbf16>, vector<8x128xf32> -> vector<8x128xf32>
    %50 = arith.addf %47, %49 : vector<8x128xf32>
    %51 = arith.negf %50 : vector<8x128xf32>
    %52 = math.exp %51 : vector<8x128xf32>
    %cst_22 = arith.constant 1.000000e+00 : f32
    %53 = vector.broadcast %cst_22 : f32 to vector<8x128xf32>
    %54 = arith.addf %53, %52 : vector<8x128xf32>
    %55 = arith.divf %53, %54 : vector<8x128xf32>
    %56 = math.tanh %50 : vector<8x128xf32>
    %57 = arith.select %16, %56, %55 : vector<8x128xi1>, vector<8x128xf32>
    %58 = vector.extract_strided_slice %57 {offsets = [0, 0], sizes = [8, 32], strides = [1, 1]} : vector<8x128xf32> to vector<8x32xf32>
    %59 = vector.extract_strided_slice %57 {offsets = [0, 32], sizes = [8, 32], strides = [1, 1]} : vector<8x128xf32> to vector<8x32xf32>
    %60 = vector.extract_strided_slice %57 {offsets = [0, 64], sizes = [8, 32], strides = [1, 1]} : vector<8x128xf32> to vector<8x32xf32>
    %61 = vector.extract_strided_slice %57 {offsets = [0, 96], sizes = [8, 32], strides = [1, 1]} : vector<8x128xf32> to vector<8x32xf32>
    %62 = arith.mulf %59, %39 : vector<8x32xf32>
    %63 = arith.mulf %58, %60 : vector<8x32xf32>
    %64 = arith.addf %62, %63 : vector<8x32xf32>
    %65 = math.tanh %64 : vector<8x32xf32>
    %66 = arith.mulf %61, %65 : vector<8x32xf32>
    %67 = arith.index_cast %45 : i32 to index
    %c0_23 = arith.constant 0 : index
    %68 = vector.load %arg15[%67, %c0_23] : memref<64x32xf32, #tpu.memory_space<vmem>>, vector<8x32xf32>
    tpu.vector_store %arg15[%67, %c0_23], %66 {strides = array<i32>} : memref<64x32xf32, #tpu.memory_space<vmem>>, vector<8x32xf32>,
    %c2_i32 = arith.constant 2 : i32
    %c8_i32_24 = arith.constant 8 : i32
    %69 = arith.muli %c2_i32, %c8_i32_24 : i32
    %70 = tpu.assume_multiple %69, 8 : i32
    %71 = arith.index_cast %70 : i32 to index
    %c0_25 = arith.constant 0 : index
    %72 = vector.load %arg14[%71, %c0_25] : memref<64x128xf32, #tpu.memory_space<vmem>>, vector<8x128xf32>
    %73 = arith.truncf %66 : vector<8x32xf32> to vector<8x32xbf16>
    %cst_26 = arith.constant dense<0.000000e+00> : vector<8x128xf32>
    %74 = tpu.matmul %73, %10, %cst_26 {dimension_numbers = #tpu.dot_dimension_numbers<[1], [0], [0], [1], [0, 0, 1, 1], [], []>} : vector<8x32xbf16>, vector<32x128xbf16>, vector<8x128xf32> -> vector<8x128xf32>
    %75 = arith.addf %72, %74 : vector<8x128xf32>
    %76 = arith.negf %75 : vector<8x128xf32>
    %77 = math.exp %76 : vector<8x128xf32>
    %cst_27 = arith.constant 1.000000e+00 : f32
    %78 = vector.broadcast %cst_27 : f32 to vector<8x128xf32>
    %79 = arith.addf %78, %77 : vector<8x128xf32>
    %80 = arith.divf %78, %79 : vector<8x128xf32>
    %81 = math.tanh %75 : vector<8x128xf32>
    %82 = arith.select %16, %81, %80 : vector<8x128xi1>, vector<8x128xf32>
    %83 = vector.extract_strided_slice %82 {offsets = [0, 0], sizes = [8, 32], strides = [1, 1]} : vector<8x128xf32> to vector<8x32xf32>
    %84 = vector.extract_strided_slice %82 {offsets = [0, 32], sizes = [8, 32], strides = [1, 1]} : vector<8x128xf32> to vector<8x32xf32>
    %85 = vector.extract_strided_slice %82 {offsets = [0, 64], sizes = [8, 32], strides = [1, 1]} : vector<8x128xf32> to vector<8x32xf32>
    %86 = vector.extract_strided_slice %82 {offsets = [0, 96], sizes = [8, 32], strides = [1, 1]} : vector<8x128xf32> to vector<8x32xf32>
    %87 = arith.mulf %84, %64 : vector<8x32xf32>
    %88 = arith.mulf %83, %85 : vector<8x32xf32>
    %89 = arith.addf %87, %88 : vector<8x32xf32>
    %90 = math.tanh %89 : vector<8x32xf32>
    %91 = arith.mulf %86, %90 : vector<8x32xf32>
    %92 = arith.index_cast %70 : i32 to index
    %c0_28 = arith.constant 0 : index
    %93 = vector.load %arg15[%92, %c0_28] : memref<64x32xf32, #tpu.memory_space<vmem>>, vector<8x32xf32>
    tpu.vector_store %arg15[%92, %c0_28], %91 {strides = array<i32>} : memref<64x32xf32, #tpu.memory_space<vmem>>, vector<8x32xf32>,
    %c3_i32 = arith.constant 3 : i32
    %c8_i32_29 = arith.constant 8 : i32
    %94 = arith.muli %c3_i32, %c8_i32_29 : i32
    %95 = tpu.assume_multiple %94, 8 : i32
    %96 = arith.index_cast %95 : i32 to index
    %c0_30 = arith.constant 0 : index
    %97 = vector.load %arg14[%96, %c0_30] : memref<64x128xf32, #tpu.memory_space<vmem>>, vector<8x128xf32>
    %98 = arith.truncf %91 : vector<8x32xf32> to vector<8x32xbf16>
    %cst_31 = arith.constant dense<0.000000e+00> : vector<8x128xf32>
    %99 = tpu.matmul %98, %10, %cst_31 {dimension_numbers = #tpu.dot_dimension_numbers<[1], [0], [0], [1], [0, 0, 1, 1], [], []>} : vector<8x32xbf16>, vector<32x128xbf16>, vector<8x128xf32> -> vector<8x128xf32>
    %100 = arith.addf %97, %99 : vector<8x128xf32>
    %101 = arith.negf %100 : vector<8x128xf32>
    %102 = math.exp %101 : vector<8x128xf32>
    %cst_32 = arith.constant 1.000000e+00 : f32
    %103 = vector.broadcast %cst_32 : f32 to vector<8x128xf32>
    %104 = arith.addf %103, %102 : vector<8x128xf32>
    %105 = arith.divf %103, %104 : vector<8x128xf32>
    %106 = math.tanh %100 : vector<8x128xf32>
    %107 = arith.select %16, %106, %105 : vector<8x128xi1>, vector<8x128xf32>
    %108 = vector.extract_strided_slice %107 {offsets = [0, 0], sizes = [8, 32], strides = [1, 1]} : vector<8x128xf32> to vector<8x32xf32>
    %109 = vector.extract_strided_slice %107 {offsets = [0, 32], sizes = [8, 32], strides = [1, 1]} : vector<8x128xf32> to vector<8x32xf32>
    %110 = vector.extract_strided_slice %107 {offsets = [0, 64], sizes = [8, 32], strides = [1, 1]} : vector<8x128xf32> to vector<8x32xf32>
    %111 = vector.extract_strided_slice %107 {offsets = [0, 96], sizes = [8, 32], strides = [1, 1]} : vector<8x128xf32> to vector<8x32xf32>
    %112 = arith.mulf %109, %89 : vector<8x32xf32>
    %113 = arith.mulf %108, %110 : vector<8x32xf32>
    %114 = arith.addf %112, %113 : vector<8x32xf32>
    %115 = math.tanh %114 : vector<8x32xf32>
    %116 = arith.mulf %111, %115 : vector<8x32xf32>
    %117 = arith.index_cast %95 : i32 to index
    %c0_33 = arith.constant 0 : index
    %118 = vector.load %arg15[%117, %c0_33] : memref<64x32xf32, #tpu.memory_space<vmem>>, vector<8x32xf32>
    tpu.vector_store %arg15[%117, %c0_33], %116 {strides = array<i32>} : memref<64x32xf32, #tpu.memory_space<vmem>>, vector<8x32xf32>,
    %c4_i32 = arith.constant 4 : i32
    %c8_i32_34 = arith.constant 8 : i32
    %119 = arith.muli %c4_i32, %c8_i32_34 : i32
    %120 = tpu.assume_multiple %119, 8 : i32
    %121 = arith.index_cast %120 : i32 to index
    %c0_35 = arith.constant 0 : index
    %122 = vector.load %arg14[%121, %c0_35] : memref<64x128xf32, #tpu.memory_space<vmem>>, vector<8x128xf32>
    %123 = arith.truncf %116 : vector<8x32xf32> to vector<8x32xbf16>
    %cst_36 = arith.constant dense<0.000000e+00> : vector<8x128xf32>
    %124 = tpu.matmul %123, %10, %cst_36 {dimension_numbers = #tpu.dot_dimension_numbers<[1], [0], [0], [1], [0, 0, 1, 1], [], []>} : vector<8x32xbf16>, vector<32x128xbf16>, vector<8x128xf32> -> vector<8x128xf32>
    %125 = arith.addf %122, %124 : vector<8x128xf32>
    %126 = arith.negf %125 : vector<8x128xf32>
    %127 = math.exp %126 : vector<8x128xf32>
    %cst_37 = arith.constant 1.000000e+00 : f32
    %128 = vector.broadcast %cst_37 : f32 to vector<8x128xf32>
    %129 = arith.addf %128, %127 : vector<8x128xf32>
    %130 = arith.divf %128, %129 : vector<8x128xf32>
    %131 = math.tanh %125 : vector<8x128xf32>
    %132 = arith.select %16, %131, %130 : vector<8x128xi1>, vector<8x128xf32>
    %133 = vector.extract_strided_slice %132 {offsets = [0, 0], sizes = [8, 32], strides = [1, 1]} : vector<8x128xf32> to vector<8x32xf32>
    %134 = vector.extract_strided_slice %132 {offsets = [0, 32], sizes = [8, 32], strides = [1, 1]} : vector<8x128xf32> to vector<8x32xf32>
    %135 = vector.extract_strided_slice %132 {offsets = [0, 64], sizes = [8, 32], strides = [1, 1]} : vector<8x128xf32> to vector<8x32xf32>
    %136 = vector.extract_strided_slice %132 {offsets = [0, 96], sizes = [8, 32], strides = [1, 1]} : vector<8x128xf32> to vector<8x32xf32>
    %137 = arith.mulf %134, %114 : vector<8x32xf32>
    %138 = arith.mulf %133, %135 : vector<8x32xf32>
    %139 = arith.addf %137, %138 : vector<8x32xf32>
    %140 = math.tanh %139 : vector<8x32xf32>
    %141 = arith.mulf %136, %140 : vector<8x32xf32>
    %142 = arith.index_cast %120 : i32 to index
    %c0_38 = arith.constant 0 : index
    %143 = vector.load %arg15[%142, %c0_38] : memref<64x32xf32, #tpu.memory_space<vmem>>, vector<8x32xf32>
    tpu.vector_store %arg15[%142, %c0_38], %141 {strides = array<i32>} : memref<64x32xf32, #tpu.memory_space<vmem>>, vector<8x32xf32>,
    %c5_i32 = arith.constant 5 : i32
    %c8_i32_39 = arith.constant 8 : i32
    %144 = arith.muli %c5_i32, %c8_i32_39 : i32
    %145 = tpu.assume_multiple %144, 8 : i32
    %146 = arith.index_cast %145 : i32 to index
    %c0_40 = arith.constant 0 : index
    %147 = vector.load %arg14[%146, %c0_40] : memref<64x128xf32, #tpu.memory_space<vmem>>, vector<8x128xf32>
    %148 = arith.truncf %141 : vector<8x32xf32> to vector<8x32xbf16>
    %cst_41 = arith.constant dense<0.000000e+00> : vector<8x128xf32>
    %149 = tpu.matmul %148, %10, %cst_41 {dimension_numbers = #tpu.dot_dimension_numbers<[1], [0], [0], [1], [0, 0, 1, 1], [], []>} : vector<8x32xbf16>, vector<32x128xbf16>, vector<8x128xf32> -> vector<8x128xf32>
    %150 = arith.addf %147, %149 : vector<8x128xf32>
    %151 = arith.negf %150 : vector<8x128xf32>
    %152 = math.exp %151 : vector<8x128xf32>
    %cst_42 = arith.constant 1.000000e+00 : f32
    %153 = vector.broadcast %cst_42 : f32 to vector<8x128xf32>
    %154 = arith.addf %153, %152 : vector<8x128xf32>
    %155 = arith.divf %153, %154 : vector<8x128xf32>
    %156 = math.tanh %150 : vector<8x128xf32>
    %157 = arith.select %16, %156, %155 : vector<8x128xi1>, vector<8x128xf32>
    %158 = vector.extract_strided_slice %157 {offsets = [0, 0], sizes = [8, 32], strides = [1, 1]} : vector<8x128xf32> to vector<8x32xf32>
    %159 = vector.extract_strided_slice %157 {offsets = [0, 32], sizes = [8, 32], strides = [1, 1]} : vector<8x128xf32> to vector<8x32xf32>
    %160 = vector.extract_strided_slice %157 {offsets = [0, 64], sizes = [8, 32], strides = [1, 1]} : vector<8x128xf32> to vector<8x32xf32>
    %161 = vector.extract_strided_slice %157 {offsets = [0, 96], sizes = [8, 32], strides = [1, 1]} : vector<8x128xf32> to vector<8x32xf32>
    %162 = arith.mulf %159, %139 : vector<8x32xf32>
    %163 = arith.mulf %158, %160 : vector<8x32xf32>
    %164 = arith.addf %162, %163 : vector<8x32xf32>
    %165 = math.tanh %164 : vector<8x32xf32>
    %166 = arith.mulf %161, %165 : vector<8x32xf32>
    %167 = arith.index_cast %145 : i32 to index
    %c0_43 = arith.constant 0 : index
    %168 = vector.load %arg15[%167, %c0_43] : memref<64x32xf32, #tpu.memory_space<vmem>>, vector<8x32xf32>
    tpu.vector_store %arg15[%167, %c0_43], %166 {strides = array<i32>} : memref<64x32xf32, #tpu.memory_space<vmem>>, vector<8x32xf32>,
    %c6_i32 = arith.constant 6 : i32
    %c8_i32_44 = arith.constant 8 : i32
    %169 = arith.muli %c6_i32, %c8_i32_44 : i32
    %170 = tpu.assume_multiple %169, 8 : i32
    %171 = arith.index_cast %170 : i32 to index
    %c0_45 = arith.constant 0 : index
    %172 = vector.load %arg14[%171, %c0_45] : memref<64x128xf32, #tpu.memory_space<vmem>>, vector<8x128xf32>
    %173 = arith.truncf %166 : vector<8x32xf32> to vector<8x32xbf16>
    %cst_46 = arith.constant dense<0.000000e+00> : vector<8x128xf32>
    %174 = tpu.matmul %173, %10, %cst_46 {dimension_numbers = #tpu.dot_dimension_numbers<[1], [0], [0], [1], [0, 0, 1, 1], [], []>} : vector<8x32xbf16>, vector<32x128xbf16>, vector<8x128xf32> -> vector<8x128xf32>
    %175 = arith.addf %172, %174 : vector<8x128xf32>
    %176 = arith.negf %175 : vector<8x128xf32>
    %177 = math.exp %176 : vector<8x128xf32>
    %cst_47 = arith.constant 1.000000e+00 : f32
    %178 = vector.broadcast %cst_47 : f32 to vector<8x128xf32>
    %179 = arith.addf %178, %177 : vector<8x128xf32>
    %180 = arith.divf %178, %179 : vector<8x128xf32>
    %181 = math.tanh %175 : vector<8x128xf32>
    %182 = arith.select %16, %181, %180 : vector<8x128xi1>, vector<8x128xf32>
    %183 = vector.extract_strided_slice %182 {offsets = [0, 0], sizes = [8, 32], strides = [1, 1]} : vector<8x128xf32> to vector<8x32xf32>
    %184 = vector.extract_strided_slice %182 {offsets = [0, 32], sizes = [8, 32], strides = [1, 1]} : vector<8x128xf32> to vector<8x32xf32>
    %185 = vector.extract_strided_slice %182 {offsets = [0, 64], sizes = [8, 32], strides = [1, 1]} : vector<8x128xf32> to vector<8x32xf32>
    %186 = vector.extract_strided_slice %182 {offsets = [0, 96], sizes = [8, 32], strides = [1, 1]} : vector<8x128xf32> to vector<8x32xf32>
    %187 = arith.mulf %184, %164 : vector<8x32xf32>
    %188 = arith.mulf %183, %185 : vector<8x32xf32>
    %189 = arith.addf %187, %188 : vector<8x32xf32>
    %190 = math.tanh %189 : vector<8x32xf32>
    %191 = arith.mulf %186, %190 : vector<8x32xf32>
    %192 = arith.index_cast %170 : i32 to index
    %c0_48 = arith.constant 0 : index
    %193 = vector.load %arg15[%192, %c0_48] : memref<64x32xf32, #tpu.memory_space<vmem>>, vector<8x32xf32>
    tpu.vector_store %arg15[%192, %c0_48], %191 {strides = array<i32>} : memref<64x32xf32, #tpu.memory_space<vmem>>, vector<8x32xf32>,
    %c7_i32 = arith.constant 7 : i32
    %c8_i32_49 = arith.constant 8 : i32
    %194 = arith.muli %c7_i32, %c8_i32_49 : i32
    %195 = tpu.assume_multiple %194, 8 : i32
    %196 = arith.index_cast %195 : i32 to index
    %c0_50 = arith.constant 0 : index
    %197 = vector.load %arg14[%196, %c0_50] : memref<64x128xf32, #tpu.memory_space<vmem>>, vector<8x128xf32>
    %198 = arith.truncf %191 : vector<8x32xf32> to vector<8x32xbf16>
    %cst_51 = arith.constant dense<0.000000e+00> : vector<8x128xf32>
    %199 = tpu.matmul %198, %10, %cst_51 {dimension_numbers = #tpu.dot_dimension_numbers<[1], [0], [0], [1], [0, 0, 1, 1], [], []>} : vector<8x32xbf16>, vector<32x128xbf16>, vector<8x128xf32> -> vector<8x128xf32>
    %200 = arith.addf %197, %199 : vector<8x128xf32>
    %201 = arith.negf %200 : vector<8x128xf32>
    %202 = math.exp %201 : vector<8x128xf32>
    %cst_52 = arith.constant 1.000000e+00 : f32
    %203 = vector.broadcast %cst_52 : f32 to vector<8x128xf32>
    %204 = arith.addf %203, %202 : vector<8x128xf32>
    %205 = arith.divf %203, %204 : vector<8x128xf32>
    %206 = math.tanh %200 : vector<8x128xf32>
    %207 = arith.select %16, %206, %205 : vector<8x128xi1>, vector<8x128xf32>
    %208 = vector.extract_strided_slice %207 {offsets = [0, 0], sizes = [8, 32], strides = [1, 1]} : vector<8x128xf32> to vector<8x32xf32>
    %209 = vector.extract_strided_slice %207 {offsets = [0, 32], sizes = [8, 32], strides = [1, 1]} : vector<8x128xf32> to vector<8x32xf32>
    %210 = vector.extract_strided_slice %207 {offsets = [0, 64], sizes = [8, 32], strides = [1, 1]} : vector<8x128xf32> to vector<8x32xf32>
    %211 = vector.extract_strided_slice %207 {offsets = [0, 96], sizes = [8, 32], strides = [1, 1]} : vector<8x128xf32> to vector<8x32xf32>
    %212 = arith.mulf %209, %189 : vector<8x32xf32>
    %213 = arith.mulf %208, %210 : vector<8x32xf32>
    %214 = arith.addf %212, %213 : vector<8x32xf32>
    %215 = math.tanh %214 : vector<8x32xf32>
    %216 = arith.mulf %211, %215 : vector<8x32xf32>
    %217 = arith.index_cast %195 : i32 to index
    %c0_53 = arith.constant 0 : index
    %218 = vector.load %arg15[%217, %c0_53] : memref<64x32xf32, #tpu.memory_space<vmem>>, vector<8x32xf32>
    tpu.vector_store %arg15[%217, %c0_53], %216 {strides = array<i32>} : memref<64x32xf32, #tpu.memory_space<vmem>>, vector<8x32xf32>,
    %c8_i32_54 = arith.constant 8 : i32
    %c0_55 = arith.constant 0 : index
    %c0_56 = arith.constant 0 : index
    %219 = vector.load %arg16[%c0_55, %c0_56] : memref<8x32xf32, #tpu.memory_space<vmem>>, vector<8x32xf32>
    tpu.vector_store %arg16[%c0_55, %c0_56], %216 {strides = array<i32>} : memref<8x32xf32, #tpu.memory_space<vmem>>, vector<8x32xf32>,
    %c0_57 = arith.constant 0 : index
    %c0_58 = arith.constant 0 : index
    %220 = vector.load %arg17[%c0_57, %c0_58] : memref<8x32xf32, #tpu.memory_space<vmem>>, vector<8x32xf32>
    tpu.vector_store %arg17[%c0_57, %c0_58], %214 {strides = array<i32>} : memref<8x32xf32, #tpu.memory_space<vmem>>, vector<8x32xf32>,
    %c0_59 = arith.constant 0 : index
    %c0_60 = arith.constant 0 : index
    %221 = vector.load %arg15[%c0_59, %c0_60] : memref<64x32xf32, #tpu.memory_space<vmem>>, vector<64x32xf32>
    %222 = math.tanh %221 : vector<64x32xf32>
    %223 = arith.truncf %222 : vector<64x32xf32> to vector<64x32xbf16>
    %c0_61 = arith.constant 0 : index
    %c0_62 = arith.constant 0 : index
    %224 = vector.load %arg7[%c0_61, %c0_62] : memref<32x64xbf16, #tpu.memory_space<vmem>>, vector<32x64xbf16>
    %cst_63 = arith.constant dense<0.000000e+00> : vector<64x64xf32>
    %225 = tpu.matmul %223, %224, %cst_63 {dimension_numbers = #tpu.dot_dimension_numbers<[1], [0], [0], [1], [0, 0, 1, 1], [], []>} : vector<64x32xbf16>, vector<32x64xbf16>, vector<64x64xf32> -> vector<64x64xf32>
    %c0_64 = arith.constant 0 : index
    %c0_65 = arith.constant 0 : index
    %226 = vector.load %arg8[%c0_64, %c0_65] : memref<1x64xf32, #tpu.memory_space<vmem>>, vector<1x64xf32>
    %227 = vector.broadcast %226 : vector<1x64xf32> to vector<64x64xf32>
    %228 = arith.addf %225, %227 : vector<64x64xf32>
    %229 = math.tanh %228 : vector<64x64xf32>
    %230 = arith.truncf %229 : vector<64x64xf32> to vector<64x64xbf16>
    %c0_66 = arith.constant 0 : index
    %c0_67 = arith.constant 0 : index
    %231 = vector.load %arg9[%c0_66, %c0_67] : memref<64x128xbf16, #tpu.memory_space<vmem>>, vector<64x128xbf16>
    %cst_68 = arith.constant dense<0.000000e+00> : vector<64x128xf32>
    %232 = tpu.matmul %230, %231, %cst_68 {dimension_numbers = #tpu.dot_dimension_numbers<[1], [0], [0], [1], [0, 0, 1, 1], [], []>} : vector<64x64xbf16>, vector<64x128xbf16>, vector<64x128xf32> -> vector<64x128xf32>
    %c0_69 = arith.constant 0 : index
    %c0_70 = arith.constant 0 : index
    %233 = vector.load %arg10[%c0_69, %c0_70] : memref<1x128xf32, #tpu.memory_space<vmem>>, vector<1x128xf32>
    %234 = vector.broadcast %233 : vector<1x128xf32> to vector<64x128xf32>
    %235 = arith.addf %232, %234 : vector<64x128xf32>
    %c0_71 = arith.constant 0 : index
    %c0_72 = arith.constant 0 : index
    %236 = vector.load %arg11[%c0_71, %c0_72] : memref<64x128xf32, #tpu.memory_space<vmem>>, vector<64x128xf32>
    tpu.vector_store %arg11[%c0_71, %c0_72], %235 {strides = array<i32>} : memref<64x128xf32, #tpu.memory_space<vmem>>, vector<64x128xf32>,
    %c0_i32_73 = arith.constant 0 : i32
    %237 = arith.cmpi eq, %arg0, %c0_i32_73 : i32
    %238 = arith.extui %237 : i1 to i32
    %c0_i32_74 = arith.constant 0 : i32
    %239 = arith.cmpi ne, %238, %c0_i32_74 : i32
    scf.if %239 {
      %c0_75 = arith.constant 0 : index
      %c0_76 = arith.constant 0 : index
      %240 = vector.load %arg12[%c0_75, %c0_76] : memref<8x32xf32, #tpu.memory_space<vmem>>, vector<8x32xf32>
      tpu.vector_store %arg12[%c0_75, %c0_76], %216 {strides = array<i32>} : memref<8x32xf32, #tpu.memory_space<vmem>>, vector<8x32xf32>,
      %c0_77 = arith.constant 0 : index
      %c0_78 = arith.constant 0 : index
      %241 = vector.load %arg13[%c0_77, %c0_78] : memref<8x32xf32, #tpu.memory_space<vmem>>, vector<8x32xf32>
      tpu.vector_store %arg13[%c0_77, %c0_78], %214 {strides = array<i32>} : memref<8x32xf32, #tpu.memory_space<vmem>>, vector<8x32xf32>,
    } else {
    }
    return
  }
  func.func @transform_0(%arg0: i32) -> (i32, i32) {
    %c0_i32 = arith.constant 0 : i32
    %c0_i32_0 = arith.constant 0 : i32
    return %arg0, %c0_i32 : i32, i32
  }
  func.func @transform_1(%arg0: i32) -> (i32, i32) {
    %c0_i32 = arith.constant 0 : i32
    %c0_i32_0 = arith.constant 0 : i32
    %c0_i32_1 = arith.constant 0 : i32
    return %c0_i32, %c0_i32_0 : i32, i32
  }
  func.func @transform_2(%arg0: i32) -> (i32, i32) {
    %c0_i32 = arith.constant 0 : i32
    %c0_i32_0 = arith.constant 0 : i32
    %c0_i32_1 = arith.constant 0 : i32
    return %c0_i32, %c0_i32_0 : i32, i32
  }
  func.func @transform_3(%arg0: i32) -> (i32, i32) {
    %c0_i32 = arith.constant 0 : i32
    %c0_i32_0 = arith.constant 0 : i32
    %c0_i32_1 = arith.constant 0 : i32
    return %c0_i32, %c0_i32_0 : i32, i32
  }
  func.func @transform_4(%arg0: i32) -> (i32, i32) {
    %c0_i32 = arith.constant 0 : i32
    %c0_i32_0 = arith.constant 0 : i32
    %c0_i32_1 = arith.constant 0 : i32
    return %c0_i32, %c0_i32_0 : i32, i32
  }
  func.func @transform_5(%arg0: i32) -> (i32, i32) {
    %c0_i32 = arith.constant 0 : i32
    %c0_i32_0 = arith.constant 0 : i32
    %c0_i32_1 = arith.constant 0 : i32
    return %c0_i32, %c0_i32_0 : i32, i32
  }
  func.func @transform_6(%arg0: i32) -> (i32, i32) {
    %c0_i32 = arith.constant 0 : i32
    %c0_i32_0 = arith.constant 0 : i32
    %c0_i32_1 = arith.constant 0 : i32
    return %c0_i32, %c0_i32_0 : i32, i32
  }
  func.func @transform_7(%arg0: i32) -> (i32, i32) {
    %c0_i32 = arith.constant 0 : i32
    %c0_i32_0 = arith.constant 0 : i32
    %c0_i32_1 = arith.constant 0 : i32
    return %c0_i32, %c0_i32_0 : i32, i32
  }
  func.func @transform_8(%arg0: i32) -> (i32, i32) {
    %c0_i32 = arith.constant 0 : i32
    %c0_i32_0 = arith.constant 0 : i32
    %c0_i32_1 = arith.constant 0 : i32
    return %c0_i32, %c0_i32_0 : i32, i32
  }
  func.func @transform_9(%arg0: i32) -> (i32, i32) {
    %c0_i32 = arith.constant 0 : i32
    %c0_i32_0 = arith.constant 0 : i32
    %c0_i32_1 = arith.constant 0 : i32
    return %c0_i32, %c0_i32_0 : i32, i32
  }
  func.func @transform_10(%arg0: i32) -> (i32, i32) {
    %c0_i32 = arith.constant 0 : i32
    %c0_i32_0 = arith.constant 0 : i32
    return %arg0, %c0_i32 : i32, i32
  }
  func.func @transform_11(%arg0: i32) -> (i32, i32) {
    %c0_i32 = arith.constant 0 : i32
    %c0_i32_0 = arith.constant 0 : i32
    %c0_i32_1 = arith.constant 0 : i32
    return %c0_i32, %c0_i32_0 : i32, i32
  }
  func.func @transform_12(%arg0: i32) -> (i32, i32) {
    %c0_i32 = arith.constant 0 : i32
    %c0_i32_0 = arith.constant 0 : i32
    %c0_i32_1 = arith.constant 0 : i32
    return %c0_i32, %c0_i32_0 : i32, i32
  }
}

</mosaic_0001>

<bundles_post_ra>
// kernel: lstm_ppo_forward.1
= control target key start
LH: loop header
LB: loop body
LE: loop exit
PB: predicated region body
PF: predicated region fallthrough
CT: control target
= control target key end

     0   :  { %vm91_vm0 = vcmask 130048   ;;  %v1431_v1 = vmov 0.0   ;;  %vm1432_vm1 = vmmov 0   ;;  %vm44_vm2 = vcmask 261120   ;;  %s1435_s19 = smov 96   ;;  %s1779_s1 = inlined_call_operand.vmem [shape: bf16[16,128], index: 1, kind: input, shape index: {}]   ;;  %s1780_s0 = inlined_call_operand.vmem [shape: bf16[64,16], index: 0, kind: input, shape index: {}]   ;;  %s1781_s3 = inlined_call_operand.vmem [shape: bf16[32,128], index: 3, kind: input, shape index: {}]   ;;  %s1782_s4 = inlined_call_operand.vmem [shape: f32[8,32], index: 4, kind: input, shape index: {}]   ;;  %s1783_s5 = inlined_call_operand.vmem [shape: f32[8,32], index: 5, kind: input, shape index: {}]   ;;  %s1784_s2 = inlined_call_operand.vmem [shape: f32[1,128], index: 2, kind: input, shape index: {}]   ;;  %s1785_s6 = inlined_call_operand.vmem [shape: bf16[32,64], index: 6, kind: input, shape index: {}]   ;;  %s1786_s12 = inlined_call_operand.vmem [shape: f32[8,32], index: 12, kind: output, shape index: {2}]   ;;  %s1787_s8 = inlined_call_operand.vmem [shape: bf16[64,128], index: 8, kind: input, shape index: {}]   ;;  %s1788_s11 = inlined_call_operand.vmem [shape: f32[8,32], index: 11, kind: output, shape index: {1}]   ;;  %s1789_s7 = inlined_call_operand.vmem [shape: f32[1,64], index: 7, kind: input, shape index: {}]   ;;  %s1790_s9 = inlined_call_operand.vmem [shape: f32[1,128], index: 9, kind: input, shape index: {}]   ;;  %s1791_s10 = inlined_call_operand.vmem [shape: f32[64,128], index: 10, kind: output, shape index: {0}]  }
   0x1   :  { %v1322_v0 = vld [vmem:[%s1779_s1] sm:$0xff]   ;;  %1233 = vmatprep.subr.bf16.mxu1 %v1431_v1  ;;  %1237 = vmatprep.mubr.msk.bf16.mxu1 %vm1432_vm1, %v1431_v1  ;;  %v1324_v3 = vld [vmem:[%s1780_s0 + $0x8] sm:$0xff]   ;;  %v1326_v5 = vld [vmem:[%s1780_s0 + $0x10] sm:$0xff]   ;;  %v181_v36 = vlaneseq  ;;  %vm1025_vm6 = vcmask 523264  }
   0x2   :  { %v1323_v2 = vld [vmem:[%s1780_s0] sm:$0xff]   ;;  %1215 = vmatprep.subr.bf16.mxu0 %v1322_v0  ;;  %v1531_v6 = vld [vmem:[%s1781_s3 + $0x8] sm:$0xff]   ;;  %v1327_v8 = vld [vmem:[%s1780_s0 + $0x18] sm:$0xff]  }
   0x3   :  { %1216 = vmatpush3.bf16.msra.mxu0 %v1322_v0  ;;  %1217 = vmatprep.mubr.msk.bf16.mxu0 %vm91_vm0, %v1323_v2  ;;  %v1517_v4 = vld [vmem:[%s1781_s3] sm:$0xff]   ;;  %v182_v38 = vand.u32 127, %v181_v36 }
   0x4   :  { %1225 = vmatprep.subr.bf16.mxu0 %v1431_v1  ;;  %1234 = vmatpush3.bf16.msra.mxu1 %v1517_v4  ;;  %v43_v7 = vld [vmem:[%s1782_s4] sm:$0xff] }
   0x5   :  { %1235 = vmatprep.subr.bf16.mxu1 %v1431_v1  ;;  %45 = vst.msk [vmem:[#allocation4] sm:$0xff] %vm44_vm2, %v43_v7  ;;  %v46_v11 = vld [vmem:[%s1783_s5] sm:$0xff]  ;;  %vm183_vm3 = vcmp.ge.s32.totalorder %v182_v38, 64  ;;  %vm184_vm4 = vcmp.lt.s32.totalorder %v182_v38, 96  ;;  %s1434_s5 = smov 32  }
   0x6   :  { %1218 = vmatmul.mubr.msk.bf16.vlgmr.msra.gmra.mrb[0].mxu0 %vm91_vm0, %v1324_v3  ;;  %47 = vst.msk [vmem:[#allocation5] sm:$0xff] %vm44_vm2, %v46_v11  ;;  %v1128_v12 = vld [vmem:[%s1784_s2] ss:$0 sm:$0xff]  ;;  %vm1574_vm5 = vmand %vm183_vm3, %vm184_vm4  ;;  %s1433_s2 = smov 64  }
   0x7   :  { %1226 = vmatpush3.bf16.msra.mxu0 %v1517_v4  ;;  %1221 = vmatprep.mubr.msk.bf16.mxu0 %vm91_vm0, %v1326_v5 }
   0x8   :  { %1227 = vmatprep.subr.bf16.mxu0 %v1431_v1  ;;  %1236 = vmatpush3.bf16.msra.mxu1 %v1531_v6 }
   0x9   :  { %1249 = vmatprep.subr.bf16.mxu1 %v1431_v1 }
   0xb   :  { %1228 = vmatpush3.bf16.msra.mxu0 %v1531_v6 }
   0xc   :  { %1241 = vmatprep.subr.bf16.mxu0 %v1431_v1  ;;  %v186_v9 = vld [vmem:[#allocation4] sm:$0xff] }
   0xd   :  { %v189_v10 = vpack.c.bf16 %v186_v9, %v186_v9  ;;  %v187_v43 = vld [vmem:[#allocation5] sm:$0xff] }
   0xe   :  { %1222 = vmatmul.mubr.msk.bf16.gmra.mrb[4].mxu0 %vm91_vm0, %v1327_v8 }
   0xf   :  { %1229 = vmatprep.mubr.msk.bf16.mxu0 %vm1432_vm1, %v1431_v1 }
  0x16   :  { %1230 = vmatmul.mubr.msk.bf16.vlgmr.msra.gmra.mrb[8].mxu0 %vm44_vm2, %v189_v10 }
  0x17   :  { %1242 = vmatpush3.bf16.msra.mxu0 %v1517_v4  ;;  %1245 = vmatprep.mubr.msk.bf16.mxu0 %vm1432_vm1, %v1431_v1 }
  0x18   :  { %1243 = vmatprep.subr.bf16.mxu0 %v1431_v1 }
  0x1b   :  { %1244 = vmatpush3.bf16.msra.mxu0 %v1531_v6 }
  0x1c   :  { %1257 = vmatprep.subr.bf16.mxu0 %v1431_v1 }
  0xd9   :  { %v1219_v13 = vpop.f32.mrb[0].mxu0 }
  0xda   :  { %v1562_v14 = vadd.f32 %v1219_v13, %v1128_v12  ;;  %v138_v15 = vpop.f32.mrb[1].mxu0 }
  0xdb   :  { %v1220_v16 = vpop.f32.mrb[2].mxu0  ;;  %v139_v28 = vadd.f32 %v1128_v12, %v138_v15 }
  0xdc   :  { %v1564_v17 = vadd.f32 %v1220_v16, %v1128_v12  ;;  %v141_v18 = vpop.f32.mrb[3].mxu0 }
  0xdd   :  { %v142_v19 = vadd.f32 %v1128_v12, %v141_v18 }
  0xe1   :  { %v1223_v20 = vpop.f32.mrb[4].mxu0 }
  0xe2   :  { %v1566_v21 = vadd.f32 %v1223_v20, %v1128_v12  ;;  %v154_v22 = vpop.f32.mrb[5].mxu0 }
  0xe3   :  { %v1568_v23 = vadd.f32 %v1128_v12, %v154_v22  ;;  %v1224_v24 = vpop.f32.mrb[6].mxu0 }
  0xe4   :  { %v1570_v25 = vadd.f32 %v1224_v24, %v1128_v12  ;;  %v157_v26 = vpop.f32.mrb[7].mxu0 }
  0xe5   :  { %v1572_v27 = vadd.f32 %v1128_v12, %v157_v26 }
  0xe9   :  { %v240_v29 = vpop.f32.mrb[8].mxu0 }
  0xea   :  { %v246_v30 = vadd.f32 %v240_v29, %v139_v28  ;;  %v1231_v31 = vpop.f32.mrb[9].mxu0 }
  0xeb   :  { %v243_v32 = vpop.f32.mrb[10].mxu0 }
  0xec   :  { %v1141_v33 = vmul.f32 -1.442695, %v246_v30  ;;  %v1232_v34 = vpop.f32.mrb[11].mxu0 }
  0xee   :  { %1335 = vpow2.f32 %v1141_v33 }
  0xef   :  { %1337 = vtanh.f32 %v246_v30 }
  0xf8   :  { %v1336_v35 = vpop.eup %1335 }
  0xf9   :  { %v250_v37 = vadd.f32 1.0, %v1336_v35  ;;  %v1338_v40 = vpop.eup %1337 }
  0xfb   :  { %1339 = vrcp.f32 %v250_v37 }
 0x105   :  { %v1340_v41 = vpop.eup %1339 }
 0x106   :  { %v254_v42 = vsel %vm1574_vm5, %v1338_v40, %v1340_v41 }
 0x107   :  { %261 = vrot.lane.b32.xlu0 %v254_v42, %s1433_s2 }
 0x10b   :  { %256 = vrot.lane.b32.xlu0 %v187_v43, %s1434_s5 }
 0x179   :  { %v262_v44 = vpop.permute.xlu0 %261 }
 0x17a   :  { %v264_v45 = vmul.f32 %v262_v44, %v254_v42 }
 0x17c   :  { %266 = vrot.lane.b32.xlu1 %v264_v45, %s1434_s5 }
 0x17d   :  { %v257_v46 = vpop.permute.xlu0 %256 }
 0x17e   :  { %v259_v47 = vmul.f32 %v257_v46, %v254_v42 }
 0x1ee   :  { %v267_v48 = vpop.permute.xlu1 %266 }
 0x1ef   :  { %v269_v49 = vadd.f32 %v267_v48, %v259_v47 }
 0x1f1   :  { %1341 = vtanh.f32 %v269_v49 }
 0x1fb   :  { %v1342_v50 = vpop.eup %1341 }
 0x1fc   :  { %272 = vrot.lane.b32.xlu1 %v1342_v50, %s1433_s2 }
 0x26e   :  { %v273_v51 = vpop.permute.xlu1 %272 }
 0x26f   :  { %v1584_v52 = vmul.f32 %v273_v51, %v254_v42 }
 0x271   :  { %v283_v53 = vpack.c.bf16 %v1584_v52, %v1584_v52 }
 0x273   :  { %285 = vrot.lane.b32.xlu0 %v283_v53, %s1434_s5 }
 0x2e5   :  { %v286_v54 = vpop.permute.xlu0 %285 }
 0x2e6   :  { %1238 = vmatmul.mubr.msk.bf16.vlgmr.msra.gmra.mrb[0].mxu1 %vm44_vm2, %v286_v54 }
 0x2e7   :  { %1250 = vmatpush3.bf16.msra.mxu1 %v1517_v4  ;;  %1253 = vmatprep.mubr.msk.bf16.mxu1 %vm1432_vm1, %v1431_v1 }
 0x2e8   :  { %1251 = vmatprep.subr.bf16.mxu1 %v1431_v1 }
 0x2eb   :  { %1252 = vmatpush3.bf16.msra.mxu1 %v1531_v6 }
 0x2ec   :  { %1265 = vmatprep.subr.bf16.mxu1 %v1431_v1 }
 0x3b9   :  { %v324_v55 = vpop.f32.mrb[0].mxu1 }
 0x3ba   :  { %v330_v56 = vadd.f32 %v324_v55, %v142_v19  ;;  %v1239_v57 = vpop.f32.mrb[1].mxu1 }
 0x3bb   :  { %v327_v58 = vpop.f32.mrb[2].mxu1 }
 0x3bc   :  { %v1143_v59 = vmul.f32 -1.442695, %v330_v56  ;;  %v1240_v60 = vpop.f32.mrb[3].mxu1 }
 0x3be   :  { %1343 = vpow2.f32 %v1143_v59 }
 0x3bf   :  { %1345 = vtanh.f32 %v330_v56 }
 0x3c8   :  { %v1344_v61 = vpop.eup %1343 }
 0x3c9   :  { %v334_v62 = vadd.f32 1.0, %v1344_v61  ;;  %v1346_v63 = vpop.eup %1345 }
 0x3cb   :  { %1347 = vrcp.f32 %v334_v62 }
 0x3d5   :  { %v1348_v0 = vpop.eup %1347 }
 0x3d6   :  { %v338_v2 = vsel %vm1574_vm5, %v1346_v63, %v1348_v0 }
 0x3d7   :  { %341 = vrot.lane.b32.xlu1 %v338_v2, %s1433_s2  ;;  %v339_v7 = vmul.f32 %v338_v2, %v269_v49 }
 0x449   :  { %v342_v3 = vpop.permute.xlu1 %341 }
 0x44a   :  { %v344_v5 = vmul.f32 %v342_v3, %v338_v2 }
 0x44c   :  { %346 = vrot.lane.b32.xlu0 %v344_v5, %s1434_s5 }
 0x4be   :  { %v347_v8 = vpop.permute.xlu0 %346 }
 0x4bf   :  { %v349_v9 = vadd.f32 %v347_v8, %v339_v7 }
 0x4c1   :  { %1349 = vtanh.f32 %v349_v9 }
 0x4cb   :  { %v1350_v10 = vpop.eup %1349 }
 0x4cc   :  { %352 = vrot.lane.b32.xlu1 %v1350_v10, %s1433_s2 }
 0x53e   :  { %v353_v11 = vpop.permute.xlu1 %352 }
 0x53f   :  { %v1601_v12 = vmul.f32 %v353_v11, %v338_v2 }
 0x541   :  { %v364_v13 = vpack.c.bf16 %v1601_v12, %v1601_v12 }
 0x543   :  { %366 = vrot.lane.b32.xlu0 %v364_v13, %s1434_s5 }
 0x5b5   :  { %v367_v15 = vpop.permute.xlu0 %366 }
 0x5b6   :  { %1246 = vmatmul.mubr.msk.bf16.vlgmr.msra.gmra.mrb[12].mxu0 %vm44_vm2, %v367_v15 }
 0x5b7   :  { %1258 = vmatpush3.bf16.msra.mxu0 %v1517_v4  ;;  %1261 = vmatprep.mubr.msk.bf16.mxu0 %vm1432_vm1, %v1431_v1 }
 0x5b8   :  { %1259 = vmatprep.subr.bf16.mxu0 %v1431_v1 }
 0x5bb   :  { %1260 = vmatpush3.bf16.msra.mxu0 %v1531_v6 }
 0x5bc   :  { %1273 = vmatprep.subr.bf16.mxu0 %v1431_v1 }
 0x689   :  { %v405_v16 = vpop.f32.mrb[12].mxu0 }
 0x68a   :  { %v411_v18 = vadd.f32 %v405_v16, %v1562_v14  ;;  %v1247_v19 = vpop.f32.mrb[13].mxu0 }
 0x68b   :  { %v408_v20 = vpop.f32.mrb[14].mxu0 }
 0x68c   :  { %v1145_v22 = vmul.f32 -1.442695, %v411_v18  ;;  %v1248_v24 = vpop.f32.mrb[15].mxu0 }
 0x68e   :  { %1351 = vpow2.f32 %v1145_v22 }
 0x68f   :  { %1353 = vtanh.f32 %v411_v18 }
 0x698   :  { %v1352_v26 = vpop.eup %1351 }
 0x699   :  { %v415_v28 = vadd.f32 1.0, %v1352_v26  ;;  %v1354_v29 = vpop.eup %1353 }
 0x69b   :  { %1355 = vrcp.f32 %v415_v28 }
 0x6a5   :  { %v1356_v30 = vpop.eup %1355 }
 0x6a6   :  { %v419_v31 = vsel %vm1574_vm5, %v1354_v29, %v1356_v30 }
 0x6a7   :  { %422 = vrot.lane.b32.xlu1 %v419_v31, %s1433_s2  ;;  %v420_v14 = vmul.f32 %v419_v31, %v349_v9 }
 0x719   :  { %v423_v32 = vpop.permute.xlu1 %422 }
 0x71a   :  { %v425_v33 = vmul.f32 %v423_v32, %v419_v31 }
 0x71c   :  { %427 = vrot.lane.b32.xlu0 %v425_v33, %s1434_s5 }
 0x78e   :  { %v428_v34 = vpop.permute.xlu0 %427 }
 0x78f   :  { %v430_v35 = vadd.f32 %v428_v34, %v420_v14 }
 0x791   :  { %1357 = vtanh.f32 %v430_v35 }
 0x79b   :  { %v1358_v36 = vpop.eup %1357 }
 0x79c   :  { %433 = vrot.lane.b32.xlu1 %v1358_v36, %s1433_s2 }
 0x80e   :  { %v434_v37 = vpop.permute.xlu1 %433 }
 0x80f   :  { %v1619_v38 = vmul.f32 %v434_v37, %v419_v31 }
 0x811   :  { %v445_v40 = vpack.c.bf16 %v1619_v38, %v1619_v38 }
 0x813   :  { %447 = vrot.lane.b32.xlu0 %v445_v40, %s1434_s5 }
 0x885   :  { %v448_v41 = vpop.permute.xlu0 %447 }
 0x886   :  { %1254 = vmatmul.mubr.msk.bf16.vlgmr.msra.gmra.mrb[4].mxu1 %vm44_vm2, %v448_v41 }
 0x887   :  { %1266 = vmatpush3.bf16.msra.mxu1 %v1517_v4  ;;  %1269 = vmatprep.mubr.msk.bf16.mxu1 %vm1432_vm1, %v1431_v1 }
 0x888   :  { %1267 = vmatprep.subr.bf16.mxu1 %v1431_v1 }
 0x88b   :  { %1268 = vmatpush3.bf16.msra.mxu1 %v1531_v6 }
 0x88c   :  { %1281 = vmatprep.subr.bf16.mxu1 %v1431_v1 }
 0x959   :  { %v486_v42 = vpop.f32.mrb[4].mxu1 }
 0x95a   :  { %v492_v43 = vadd.f32 %v486_v42, %v1564_v17  ;;  %v1255_v44 = vpop.f32.mrb[5].mxu1 }
 0x95b   :  { %v489_v45 = vpop.f32.mrb[6].mxu1 }
 0x95c   :  { %v1147_v46 = vmul.f32 -1.442695, %v492_v43  ;;  %v1256_v47 = vpop.f32.mrb[7].mxu1 }
 0x95e   :  { %1359 = vpow2.f32 %v1147_v46 }
 0x95f   :  { %1361 = vtanh.f32 %v492_v43 }
 0x968   :  { %v1360_v48 = vpop.eup %1359 }
 0x969   :  { %v496_v49 = vadd.f32 1.0, %v1360_v48  ;;  %v1362_v50 = vpop.eup %1361 }
 0x96b   :  { %1363 = vrcp.f32 %v496_v49 }
 0x975   :  { %v1364_v51 = vpop.eup %1363 }
 0x976   :  { %v500_v53 = vsel %vm1574_vm5, %v1362_v50, %v1364_v51 }
 0x977   :  { %503 = vrot.lane.b32.xlu1 %v500_v53, %s1433_s2  ;;  %v501_v17 = vmul.f32 %v500_v53, %v430_v35 }
 0x9e9   :  { %v504_v54 = vpop.permute.xlu1 %503 }
 0x9ea   :  { %v506_v55 = vmul.f32 %v504_v54, %v500_v53 }
 0x9ec   :  { %508 = vrot.lane.b32.xlu0 %v506_v55, %s1434_s5 }
 0xa5e   :  { %v509_v56 = vpop.permute.xlu0 %508 }
 0xa5f   :  { %v511_v57 = vadd.f32 %v509_v56, %v501_v17 }
 0xa61   :  { %1365 = vtanh.f32 %v511_v57 }
 0xa6b   :  { %v1366_v58 = vpop.eup %1365 }
 0xa6c   :  { %514 = vrot.lane.b32.xlu1 %v1366_v58, %s1433_s2 }
 0xade   :  { %v515_v59 = vpop.permute.xlu1 %514 }
 0xadf   :  { %v1637_v60 = vmul.f32 %v515_v59, %v500_v53 }
 0xae1   :  { %v526_v61 = vpack.c.bf16 %v1637_v60, %v1637_v60 }
 0xae3   :  { %528 = vrot.lane.b32.xlu0 %v526_v61, %s1434_s5 }
 0xb55   :  { %v529_v62 = vpop.permute.xlu0 %528 }
 0xb56   :  { %1262 = vmatmul.mubr.msk.bf16.vlgmr.msra.gmra.mrb[16].mxu0 %vm44_vm2, %v529_v62 }
 0xb57   :  { %1274 = vmatpush3.bf16.msra.mxu0 %v1517_v4  ;;  %1277 = vmatprep.mubr.msk.bf16.mxu0 %vm1432_vm1, %v1431_v1 }
 0xb58   :  { %1275 = vmatprep.subr.bf16.mxu0 %v1431_v1 }
 0xb5b   :  { %1276 = vmatpush3.bf16.msra.mxu0 %v1531_v6 }
 0xc29   :  { %v567_v63 = vpop.f32.mrb[16].mxu0 }
 0xc2a   :  { %v573_v0 = vadd.f32 %v567_v63, %v1568_v23  ;;  %v1263_v2 = vpop.f32.mrb[17].mxu0 }
 0xc2b   :  { %v570_v3 = vpop.f32.mrb[18].mxu0 }
 0xc2c   :  { %v1149_v5 = vmul.f32 -1.442695, %v573_v0  ;;  %v1264_v7 = vpop.f32.mrb[19].mxu0 }
 0xc2e   :  { %1367 = vpow2.f32 %v1149_v5 }
 0xc2f   :  { %1369 = vtanh.f32 %v573_v0 }
 0xc38   :  { %v1368_v8 = vpop.eup %1367 }
 0xc39   :  { %v577_v9 = vadd.f32 1.0, %v1368_v8  ;;  %v1370_v10 = vpop.eup %1369 }
 0xc3b   :  { %1371 = vrcp.f32 %v577_v9 }
 0xc45   :  { %v1372_v11 = vpop.eup %1371 }
 0xc46   :  { %v581_v13 = vsel %vm1574_vm5, %v1370_v10, %v1372_v11 }
 0xc47   :  { %584 = vrot.lane.b32.xlu1 %v581_v13, %s1433_s2  ;;  %v582_v23 = vmul.f32 %v581_v13, %v511_v57 }
 0xcb9   :  { %v585_v15 = vpop.permute.xlu1 %584 }
 0xcba   :  { %v587_v16 = vmul.f32 %v585_v15, %v581_v13 }
 0xcbc   :  { %589 = vrot.lane.b32.xlu0 %v587_v16, %s1434_s5 }
 0xd2e   :  { %v590_v18 = vpop.permute.xlu0 %589 }
 0xd2f   :  { %v592_v19 = vadd.f32 %v590_v18, %v582_v23 }
 0xd31   :  { %1373 = vtanh.f32 %v592_v19 }
 0xd3b   :  { %v1374_v20 = vpop.eup %1373 }
 0xd3c   :  { %595 = vrot.lane.b32.xlu1 %v1374_v20, %s1433_s2 }
 0xdae   :  { %v596_v22 = vpop.permute.xlu1 %595 }
 0xdaf   :  { %v1654_v24 = vmul.f32 %v596_v22, %v581_v13 }
 0xdb1   :  { %v607_v26 = vpack.c.bf16 %v1654_v24, %v1654_v24 }
 0xdb3   :  { %609 = vrot.lane.b32.xlu0 %v607_v26, %s1434_s5 }
 0xe25   :  { %v610_v28 = vpop.permute.xlu0 %609 }
 0xe26   :  { %1270 = vmatmul.mubr.msk.bf16.vlgmr.msra.gmra.mrb[8].mxu1 %vm44_vm2, %v610_v28 }
 0xe27   :  { %1282 = vmatpush3.bf16.msra.mxu1 %v1517_v4  ;;  %1285 = vmatprep.mubr.msk.bf16.mxu1 %vm1432_vm1, %v1431_v1 }
 0xe28   :  { %1283 = vmatprep.subr.bf16.mxu1 %v1431_v1 }
 0xe2b   :  { %1284 = vmatpush3.bf16.msra.mxu1 %v1531_v6 }
 0xef9   :  { %v648_v29 = vpop.f32.mrb[8].mxu1 }
 0xefa   :  { %v654_v30 = vadd.f32 %v648_v29, %v1572_v27  ;;  %v1271_v31 = vpop.f32.mrb[9].mxu1 }
 0xefb   :  { %v651_v32 = vpop.f32.mrb[10].mxu1 }
 0xefc   :  { %v1151_v33 = vmul.f32 -1.442695, %v654_v30  ;;  %v1272_v14 = vpop.f32.mrb[11].mxu1 }
 0xefe   :  { %1375 = vpow2.f32 %v1151_v33 }
 0xeff   :  { %1377 = vtanh.f32 %v654_v30 }
 0xf08   :  { %v1376_v34 = vpop.eup %1375 }
 0xf09   :  { %v658_v35 = vadd.f32 1.0, %v1376_v34  ;;  %v1378_v4 = vpop.eup %1377 }
 0xf0b   :  { %1379 = vrcp.f32 %v658_v35 }
 0xf15   :  { %v1380_v36 = vpop.eup %1379 }
 0xf16   :  { %v662_v37 = vsel %vm1574_vm5, %v1378_v4, %v1380_v36 }
 0xf17   :  { %665 = vrot.lane.b32.xlu1 %v662_v37, %s1433_s2  ;;  %v663_v27 = vmul.f32 %v662_v37, %v592_v19 }
 0xf89   :  { %v666_v1 = vpop.permute.xlu1 %665 }
 0xf8a   :  { %v668_v6 = vmul.f32 %v666_v1, %v662_v37 }
 0xf8c   :  { %670 = vrot.lane.b32.xlu0 %v668_v6, %s1434_s5 }
 0xffe   :  { %v671_v40 = vpop.permute.xlu0 %670 }
 0xfff   :  { %v673_v41 = vadd.f32 %v671_v40, %v663_v27 }
0x1001   :  { %1381 = vtanh.f32 %v673_v41 }
0x100b   :  { %v1382_v42 = vpop.eup %1381 }
0x100c   :  { %676 = vrot.lane.b32.xlu1 %v1382_v42, %s1433_s2 }
0x107e   :  { %v677_v43 = vpop.permute.xlu1 %676 }
0x107f   :  { %v1671_v44 = vmul.f32 %v677_v43, %v662_v37 }
0x1081   :  { %v688_v45 = vpack.c.bf16 %v1671_v44, %v1671_v44 }
0x1083   :  { %690 = vrot.lane.b32.xlu0 %v688_v45, %s1434_s5 }
0x10f5   :  { %v691_v46 = vpop.permute.xlu0 %690 }
0x10f6   :  { %1278 = vmatmul.mubr.msk.bf16.vlgmr.msra.gmra.mrb[20].mxu0 %vm44_vm2, %v691_v46 }
0x11c9   :  { %v729_v47 = vpop.f32.mrb[20].mxu0 }
0x11ca   :  { %v735_v48 = vadd.f32 %v729_v47, %v1566_v21  ;;  %v1279_v49 = vpop.f32.mrb[21].mxu0 }
0x11cb   :  { %v732_v50 = vpop.f32.mrb[22].mxu0 }
0x11cc   :  { %v1153_v51 = vmul.f32 -1.442695, %v735_v48  ;;  %v1280_v53 = vpop.f32.mrb[23].mxu0  ;;  %v1332_v50 = vld [vmem:[%s1787_s8 + $0x8] sm:$0xff]  }
0x11ce   :  { %1383 = vpow2.f32 %v1153_v51  ;;  %v1333_v51 = vld [vmem:[%s1787_s8 + $0x10] sm:$0xff]  }
0x11cf   :  { %1385 = vtanh.f32 %v735_v48  ;;  %v1331_v48 = vld [vmem:[%s1787_s8] sm:$0xff]  }
0x11d0   :  { %1301 = vmatprep.subr.bf16.mxu1 %v1331_v48 }
0x11d8   :  { %v1384_v54 = vpop.eup %1383 }
0x11d9   :  { %v739_v55 = vadd.f32 1.0, %v1384_v54  ;;  %v1386_v17 = vpop.eup %1385  ;;  %v1334_v54 = vld [vmem:[%s1787_s8 + $0x18] sm:$0xff]  }
0x11db   :  { %1387 = vrcp.f32 %v739_v55 }
0x11e5   :  { %v1388_v56 = vpop.eup %1387 }
0x11e6   :  { %v743_v57 = vsel %vm1574_vm5, %v1386_v17, %v1388_v56 }
0x11e7   :  { %746 = vrot.lane.b32.xlu1 %v743_v57, %s1433_s2  ;;  %v744_v21 = vmul.f32 %v743_v57, %v673_v41 }
0x1259   :  { %v747_v58 = vpop.permute.xlu1 %746 }
0x125a   :  { %v749_v59 = vmul.f32 %v747_v58, %v743_v57  ;;  %v1156_v58 = vld [vmem:[%s1789_s7] ss:$0 sm:$0xff] }
0x125c   :  { %751 = vrot.lane.b32.xlu0 %v749_v59, %s1434_s5 }
0x12ce   :  { %v752_v61 = vpop.permute.xlu0 %751 }
0x12cf   :  { %v754_v62 = vadd.f32 %v752_v61, %v744_v21 }
0x12d1   :  { %1389 = vtanh.f32 %v754_v62 }
0x12db   :  { %v1390_v63 = vpop.eup %1389 }
0x12dc   :  { %757 = vrot.lane.b32.xlu1 %v1390_v63, %s1433_s2 }
0x134e   :  { %v758_v0 = vpop.permute.xlu1 %757 }
0x134f   :  { %v760_v2 = vmul.f32 %v758_v0, %v743_v57 }
0x1351   :  { %v769_v3 = vpack.c.bf16 %v760_v2, %v760_v2 }
0x1353   :  { %771 = vrot.lane.b32.xlu0 %v769_v3, %s1434_s5 }
0x13c5   :  { %v772_v5 = vpop.permute.xlu0 %771 }
0x13c6   :  { %1286 = vmatmul.mubr.msk.bf16.vlgmr.msra.gmra.mrb[12].mxu1 %vm44_vm2, %v772_v5 }
0x13c7   :  { %1302 = vmatpush3.bf16.msra.mxu1 %v1331_v48 }
0x13c8   :  { %1303 = vmatprep.subr.bf16.mxu1 %v1332_v50 }
0x13cb   :  { %1304 = vmatpush3.bf16.msra.mxu1 %v1332_v50 }
0x13cc   :  { %1305 = vmatprep.subr.bf16.mxu1 %v1333_v51 }
0x13cf   :  { %1306 = vmatpush3.bf16.msra.mxu1 %v1333_v51 }
0x13d0   :  { %1307 = vmatprep.subr.bf16.mxu1 %v1334_v54 }
0x13d3   :  { %1308 = vmatpush3.bf16.msra.mxu1 %v1334_v54 }
0x1499   :  { %v810_v7 = vpop.f32.mrb[12].mxu1 }
0x149a   :  { %v816_v8 = vadd.f32 %v810_v7, %v1570_v25  ;;  %v1287_v9 = vpop.f32.mrb[13].mxu1 }
0x149b   :  { %v813_v10 = vpop.f32.mrb[14].mxu1 }
0x149c   :  { %v1155_v11 = vmul.f32 -1.442695, %v816_v8  ;;  %v1288_v13 = vpop.f32.mrb[15].mxu1 }
0x149e   :  { %1391 = vpow2.f32 %v1155_v11 }
0x149f   :  { %1393 = vtanh.f32 %v816_v8 }
0x14a8   :  { %v1392_v15 = vpop.eup %1391 }
0x14a9   :  { %v820_v16 = vadd.f32 1.0, %v1392_v15  ;;  %v1394_v23 = vpop.eup %1393 }
0x14ab   :  { %1395 = vrcp.f32 %v820_v16 }
0x14b5   :  { %v1396_v18 = vpop.eup %1395 }
0x14b6   :  { %v824_v19 = vsel %vm1574_vm5, %v1394_v23, %v1396_v18 }
0x14b7   :  { %827 = vrot.lane.b32.xlu1 %v824_v19, %s1433_s2  ;;  %v825_v25 = vmul.f32 %v824_v19, %v754_v62 }
0x1529   :  { %v828_v20 = vpop.permute.xlu1 %827 }
0x152a   :  { %v830_v22 = vmul.f32 %v828_v20, %v824_v19 }
0x152c   :  { %832 = vrot.lane.b32.xlu0 %v830_v22, %s1434_s5 }
0x1530   :  { %277 = vrot.lane.b32.xlu0 %v1584_v52, %s1434_s5 }
0x1534   :  { %438 = vrot.lane.b32.xlu0 %v1619_v38, %s1434_s5  ;;  %v1329_v38 = vld [vmem:[%s1785_s6] sm:$0xff]  }
0x1535   :  { %1289 = vmatprep.subr.bf16.mxu0 %v1329_v38 }
0x1536   :  { %1290 = vmatpush3.bf16.msra.mxu0 %v1329_v38 }
0x1538   :  { %600 = vrot.lane.b32.xlu0 %v1654_v24, %s1434_s5  ;;  %v1330_v24 = vld [vmem:[%s1785_s6 + $0x8] sm:$0xff]  }
0x1539   :  { %1291 = vmatprep.subr.bf16.mxu0 %v1330_v24 }
0x153a   :  { %1292 = vmatpush3.bf16.msra.mxu0 %v1330_v24 }
0x153c   :  { %762 = vrot.lane.b32.xlu0 %v760_v2, %s1434_s5 }
0x159e   :  { %v833_v39 = vpop.permute.xlu0 %832 }
0x159f   :  { %v835_v26 = vadd.f32 %v833_v39, %v825_v25 }
0x15a1   :  { %1397 = vtanh.f32 %v835_v26  ;;  %850 = vrot.lane.b32.xlu0 %v835_v26, %s1435_s19 }
0x15a2   :  { %v278_v28 = vpop.permute.xlu0 %277 }
0x15a3   :  { %280 = vst.msk [vmem:[#allocation3] sm:$0xff] %vm44_vm2, %v278_v28 }
0x15a6   :  { %v439_v29 = vpop.permute.xlu0 %438 }
0x15a7   :  { %442 = vst.msk [vmem:[#allocation3 + $0x10] sm:$0xff] %vm44_vm2, %v439_v29 }
0x15aa   :  { %v601_v52 = vpop.permute.xlu0 %600 }
0x15ab   :  { %v1398_v30 = vpop.eup %1397  ;;  %604 = vst.msk [vmem:[#allocation3 + $0x20] sm:$0xff] %vm44_vm2, %v601_v52 }
0x15ac   :  { %838 = vrot.lane.b32.xlu1 %v1398_v30, %s1433_s2  ;;  %v1163_v30 = vld [vmem:[%s1790_s9] ss:$0 sm:$0xff] }
0x15ae   :  { %v763_v31 = vpop.permute.xlu0 %762  ;;  %v856_v36 = vld [vmem:[#allocation3 + $0x10] sm:$0xff] }
0x15af   :  { %766 = vst.msk [vmem:[#allocation3 + $0x30] sm:$0xff] %vm44_vm2, %v763_v31 }
0x15b0   :  { %357 = vrot.lane.b32.xlu1 %v1601_v12, %s1434_s5 }
0x15b2   :  { %v858_v1 = vld [vmem:[#allocation3 + $0x20] sm:$0xff] }
0x15b4   :  { %519 = vrot.lane.b32.xlu1 %v1637_v60, %s1434_s5  ;;  %v854_v60 = vld [vmem:[#allocation3] sm:$0xff] }
0x15b5   :  { %1399 = vtanh.f32 %v854_v60 }
0x15b6   :  { %v860_v53 = vld [vmem:[#allocation3 + $0x30] sm:$0xff] }
0x15b8   :  { %681 = vrot.lane.b32.xlu1 %v1671_v44, %s1434_s5 }
0x15bf   :  { %v1400_v27 = vpop.eup %1399 }
0x1613   :  { %v851_v32 = vpop.permute.xlu0 %850 }
0x1614   :  { %853 = vst.msk [vmem:[#allocation5] sm:$0xff] %vm44_vm2, %v851_v32  ;;  %1115 = vst.msk [vmem:[%s1786_s12] sm:$0xff] %vm44_vm2, %v851_v32 }
0x161e   :  { %v839_v33 = vpop.permute.xlu1 %838 }
0x161f   :  { %v841_v14 = vmul.f32 %v839_v33, %v824_v19 }
0x1621   :  { %843 = vrot.lane.b32.xlu1 %v841_v14, %s1434_s5 }
0x1622   :  { %v358_v12 = vpop.permute.xlu1 %357 }
0x1623   :  { %361 = vst.msk [vmem:[#allocation3 + $0x8] sm:$0xff] %vm44_vm2, %v358_v12 }
0x1626   :  { %v520_v34 = vpop.permute.xlu1 %519 }
0x1627   :  { %523 = vst.msk [vmem:[#allocation3 + $0x18] sm:$0xff] %vm44_vm2, %v520_v34 }
0x162a   :  { %v682_v35 = vpop.permute.xlu1 %681  ;;  %v855_v4 = vld [vmem:[#allocation3 + $0x8] sm:$0xff] }
0x162b   :  { %685 = vst.msk [vmem:[#allocation3 + $0x28] sm:$0xff] %vm44_vm2, %v682_v35  ;;  %1401 = vtanh.f32 %v855_v4 }
0x162c   :  { %1403 = vtanh.f32 %v856_v36 }
0x162e   :  { %v857_v37 = vld [vmem:[#allocation3 + $0x18] sm:$0xff] }
0x162f   :  { %1405 = vtanh.f32 %v857_v37 }
0x1630   :  { %1407 = vtanh.f32 %v858_v1 }
0x1632   :  { %v859_v6 = vld [vmem:[#allocation3 + $0x28] sm:$0xff] }
0x1633   :  { %1409 = vtanh.f32 %v859_v6 }
0x1634   :  { %1411 = vtanh.f32 %v860_v53 }
0x1635   :  { %v1402_v40 = vpop.eup %1401 }
0x1636   :  { %v870_v41 = vpack.c.bf16 %v1402_v40, %v1400_v27  ;;  %v1404_v42 = vpop.eup %1403 }
0x1638   :  { %1293 = vmatprep.mubr.msk.bf16.mxu0 %vm44_vm2, %v870_v41 }
0x1639   :  { %v1406_v43 = vpop.eup %1405 }
0x163a   :  { %v871_v44 = vpack.c.bf16 %v1406_v43, %v1404_v42  ;;  %v1408_v45 = vpop.eup %1407 }
0x163c   :  { %1294 = vmatmul.mubr.msk.bf16.vlgmr.msra.gmra.mrb[24].mxu0 %vm44_vm2, %v871_v44 }
0x163d   :  { %v1410_v46 = vpop.eup %1409 }
0x163e   :  { %v872_v47 = vpack.c.bf16 %v1410_v46, %v1408_v45  ;;  %v1412_v17 = vpop.eup %1411 }
0x1640   :  { %1297 = vmatprep.mubr.msk.bf16.mxu0 %vm44_vm2, %v872_v47 }
0x1693   :  { %v844_v49 = vpop.permute.xlu1 %843 }
0x1694   :  { %847 = vst.msk [vmem:[#allocation3 + $0x38] sm:$0xff] %vm44_vm2, %v844_v49  ;;  %848 = vst.msk [vmem:[#allocation4] sm:$0xff] %vm44_vm2, %v844_v49 }
0x1695   :  { %1114 = vst.msk [vmem:[%s1788_s11] sm:$0xff] %vm44_vm2, %v844_v49 }
0x169b   :  { %v861_v55 = vld [vmem:[#allocation3 + $0x38] sm:$0xff] }
0x169c   :  { %1413 = vtanh.f32 %v861_v55 }
0x16a6   :  { %v1414_v56 = vpop.eup %1413 }
0x16a7   :  { %v873_v57 = vpack.c.bf16 %v1414_v56, %v1412_v17 }
0x16a9   :  { %1298 = vmatmul.mubr.msk.bf16.gmra.mrb[28].mxu0 %vm44_vm2, %v873_v57 }
0x170f   :  { %v1295_v59 = vpop.f32.mrb[24].mxu0 }
0x1710   :  { %v952_v21 = vadd.f32 %v1295_v59, %v1156_v58  ;;  %v943_v61 = vpop.f32.mrb[25].mxu0 }
0x1711   :  { %v944_v62 = vadd.f32 %v1156_v58, %v943_v61  ;;  %v1296_v63 = vpop.f32.mrb[26].mxu0 }
0x1712   :  { %1415 = vtanh.f32 %v952_v21  ;;  %v955_v0 = vadd.f32 %v1296_v63, %v1156_v58  ;;  %v946_v2 = vpop.f32.mrb[27].mxu0 }
0x1713   :  { %1417 = vtanh.f32 %v944_v62  ;;  %v947_v3 = vadd.f32 %v1156_v58, %v946_v2 }
0x1714   :  { %1419 = vtanh.f32 %v955_v0 }
0x1715   :  { %1421 = vtanh.f32 %v947_v3 }
0x171c   :  { %v1416_v5 = vpop.eup %1415 }
0x171d   :  { %v1418_v7 = vpop.eup %1417 }
0x171e   :  { %v1420_v8 = vpop.eup %1419 }
0x171f   :  { %v1422_v9 = vpop.eup %1421  ;;  %v983_v10 = vpack.c.bf16 %v1420_v8, %v1416_v5 }
0x1720   :  { %v982_v11 = vpack.c.bf16 %v1422_v9, %v1418_v7 }
0x1722   :  { %1309 = vmatprep.mubr.msk.bf16.mxu1 %vm1025_vm6, %v982_v11 }
0x1723   :  { %1310 = vmatmul.mubr.msk.bf16.vlgmr.msra.gmra.mrb[16].mxu1 %vm1025_vm6, %v983_v10 }
0x177c   :  { %v1299_v13 = vpop.f32.mrb[28].mxu0 }
0x177d   :  { %v968_v15 = vadd.f32 %v1299_v13, %v1156_v58  ;;  %v959_v16 = vpop.f32.mrb[29].mxu0 }
0x177e   :  { %v960_v23 = vadd.f32 %v1156_v58, %v959_v16  ;;  %v1300_v18 = vpop.f32.mrb[30].mxu0 }
0x177f   :  { %1423 = vtanh.f32 %v968_v15  ;;  %v971_v19 = vadd.f32 %v1300_v18, %v1156_v58  ;;  %v962_v20 = vpop.f32.mrb[31].mxu0 }
0x1780   :  { %1425 = vtanh.f32 %v960_v23  ;;  %v963_v22 = vadd.f32 %v1156_v58, %v962_v20 }
0x1781   :  { %1427 = vtanh.f32 %v971_v19 }
0x1782   :  { %1429 = vtanh.f32 %v963_v22 }
0x1789   :  { %v1424_v25 = vpop.eup %1423 }
0x178a   :  { %v1426_v39 = vpop.eup %1425 }
0x178b   :  { %v1428_v26 = vpop.eup %1427 }
0x178c   :  { %v1430_v28 = vpop.eup %1429  ;;  %v985_v29 = vpack.c.bf16 %v1428_v26, %v1424_v25 }
0x178d   :  { %v984_v52 = vpack.c.bf16 %v1430_v28, %v1426_v39 }
0x178f   :  { %1313 = vmatprep.mubr.msk.bf16.mxu1 %vm1025_vm6, %v984_v52 }
0x1790   :  { %1314 = vmatmul.mubr.msk.bf16.gmra.mrb[20].mxu1 %vm1025_vm6, %v985_v29 }
0x17f6   :  { %v1311_v38 = vpop.f32.mrb[16].mxu1 }
0x17f7   :  { %v1081_v24 = vadd.f32 %v1311_v38, %v1163_v30  ;;  %v1072_v31 = vpop.f32.mrb[17].mxu1 }
0x17f8   :  { %v1073_v32 = vadd.f32 %v1163_v30, %v1072_v31  ;;  %v1312_v33 = vpop.f32.mrb[18].mxu1 }
0x17f9   :  { %1105 = vst [vmem:[%s1791_s10 + $0x10] sm:$0xff] %v1081_v24  ;;  %v1084_v14 = vadd.f32 %v1312_v33, %v1163_v30  ;;  %v1075_v12 = vpop.f32.mrb[19].mxu1 }
0x17fa   :  { %1103 = vst [vmem:[%s1791_s10] sm:$0xff] %v1073_v32  ;;  %v1076_v34 = vadd.f32 %v1163_v30, %v1075_v12 }
0x17fb   :  { %1106 = vst [vmem:[%s1791_s10 + $0x18] sm:$0xff] %v1084_v14 }
0x17fc   :  { %1104 = vst [vmem:[%s1791_s10 + $0x8] sm:$0xff] %v1076_v34 }
0x1863   :  { %v1315_v60 = vpop.f32.mrb[20].mxu1 }
0x1864   :  { %v1097_v35 = vadd.f32 %v1315_v60, %v1163_v30  ;;  %v1088_v4 = vpop.f32.mrb[21].mxu1 }
0x1865   :  { %v1089_v36 = vadd.f32 %v1163_v30, %v1088_v4  ;;  %v1316_v37 = vpop.f32.mrb[22].mxu1 }
0x1866   :  { %1109 = vst [vmem:[%s1791_s10 + $0x30] sm:$0xff] %v1097_v35  ;;  %v1100_v1 = vadd.f32 %v1316_v37, %v1163_v30  ;;  %v1091_v6 = vpop.f32.mrb[23].mxu1 }
0x1867   :  { %1107 = vst [vmem:[%s1791_s10 + $0x20] sm:$0xff] %v1089_v36  ;;  %v1092_v27 = vadd.f32 %v1163_v30, %v1091_v6 }
0x1868   :  { %1110 = vst [vmem:[%s1791_s10 + $0x38] sm:$0xff] %v1100_v1 }
0x1869   :  { %1108 = vst [vmem:[%s1791_s10 + $0x28] sm:$0xff] %v1092_v27 }

</bundles_post_ra>
